<compile_context>
chip_gen: v6e
topology: v6e:2x2x1
jax: 0.10.0
libtpu: 0.0.40
codegen_flags: <defaults>
</compile_context>

<pallas_src>
import functools

import jax
import jax.numpy as jnp
import numpy as np
from jax import lax
from jax.experimental import pallas as pl
from jax.experimental.pallas import tpu as pltpu


# ----------------------------- Pallas kernel ------------------------------ #

def _fused_matmul_bn_kernel(*refs, apply_relu, has_residual):
    # refs (has_residual=True):  patches, weights, bias, residual, out
    # refs (has_residual=False): patches, weights, bias, out
    if has_residual:
        p_ref, w_ref, bias_ref, res_ref, o_ref = refs
    else:
        p_ref, w_ref, bias_ref, o_ref = refs
        res_ref = None
    # Single bf16 MXU matmul per tile (taps folded into the contraction),
    # f32 accumulation.
    acc = jnp.dot(p_ref[...], w_ref[...], preferred_element_type=jnp.float32)
    out = acc + bias_ref[...]              # folded BatchNorm (scale is in the weights)
    if has_residual:
        out = out + res_ref[...].astype(jnp.float32)
    if apply_relu:
        out = jnp.maximum(out, 0.0)
    o_ref[...] = out.astype(o_ref.dtype)


# --------------------------- tiling / VMEM sizing -------------------------- #

def _round_up(x, m):
    return (x + m - 1) // m * m


def _cdiv(a, b):
    return (a + b - 1) // b


@functools.lru_cache(maxsize=None)
def _vmem_budget_bytes():
    """~75% of physical VMEM (48 MiB on v7x, ~96 MiB on v5e/v6e)."""
    try:
        cap = int(pltpu.get_tpu_info().vmem_capacity_bytes)
    except Exception:
        cap = 64 << 20  # conservative fallback (v7x per-TC VMEM)
    return cap * 3 // 4


def _tile_bytes(tm, kc, tn, has_residual, out_bytes):
    return (tm * kc * 2                      # bf16 patches
            + kc * tn * 2                    # bf16 scale-folded weights
            + tn * 4                         # f32 bias
            + (tm * tn * 2 if has_residual else 0)   # bf16 residual
            + tm * tn * out_bytes)           # output tile


def _choose_tiling(M, KC, TN, has_residual, out_bytes):
    budget = _vmem_budget_bytes()
    headroom = 4 << 20
    # Generation-dependent M cap: 1024 rows when VMEM budget is large
    # (v5e/v6e -> halves weight re-fetch + grid overhead), else 512 (v7x).
    tm_cap = 1024 if budget >= (80 << 20) else 512
    while tm_cap > 64 and (2 * _tile_bytes(tm_cap, KC, TN, has_residual, out_bytes)
                           + headroom) > budget:
        tm_cap //= 2
    # Balanced M tiles so the last tile is not mostly padding.
    M8 = _round_up(M, 8)
    n_tiles = _cdiv(M8, tm_cap)
    TM = _round_up(_cdiv(M8, n_tiles), 8)
    Mpad = TM * n_tiles
    vmem_limit = int(min(
        max(2 * _tile_bytes(TM, KC, TN, has_residual, out_bytes) + 2 * headroom,
            32 << 20),
        budget))
    return TM, Mpad, vmem_limit


# ----------------------------- fused matmul+BN ----------------------------- #

def fused_matmul_bn(patches, w, bias, residual, *, apply_relu,
                    out_dtype=jnp.float32):
    """out[m, co] = relu?( (patches @ w)[m, co] + bias[co] (+ residual[m, co]) )

    patches:  (M, KC)       KC = round_up(taps*Cin, 128), lane-dense contraction
    w:        (KC, Cout_p)  BN scale pre-folded, Cout_p multiple of 128
    bias:     (1, Cout_p)   folded BN bias (f32)
    residual: (M, Cout_p) or None
    """
    M, KC = patches.shape
    Cout_p = w.shape[-1]
    has_residual = residual is not None

    patches = patches.astype(jnp.bfloat16)
    w = w.astype(jnp.bfloat16)
    bias = bias.astype(jnp.float32)
    if has_residual:
        residual = residual.astype(jnp.bfloat16)

    TN = 256 if Cout_p % 256 == 0 else 128
    out_bytes = jnp.dtype(out_dtype).itemsize
    TM, Mpad, vmem_limit = _choose_tiling(M, KC, TN, has_residual, out_bytes)

    if Mpad != M:
        patches = jnp.pad(patches, ((0, Mpad - M), (0, 0)))
        if has_residual:
            residual = jnp.pad(residual, ((0, Mpad - M), (0, 0)))

    grid = (Mpad // TM, Cout_p // TN)

    in_specs = [
        pl.BlockSpec((TM, KC), lambda i, j: (i, 0)),   # patches (resident over j)
        pl.BlockSpec((KC, TN), lambda i, j: (0, j)),   # weights (resident over i-inner)
        pl.BlockSpec((1, TN), lambda i, j: (0, j)),    # folded BN bias
    ]
    args = [patches, w, bias]
    if has_residual:
        in_specs.append(pl.BlockSpec((TM, TN), lambda i, j: (i, j)))
        args.append(residual)

    kernel = functools.partial(_fused_matmul_bn_kernel,
                               apply_relu=apply_relu,
                               has_residual=has_residual)

    out = pl.pallas_call(
        kernel,
        out_shape=jax.ShapeDtypeStruct((Mpad, Cout_p), out_dtype),
        grid=grid,
        in_specs=in_specs,
        out_specs=pl.BlockSpec((TM, TN), lambda i, j: (i, j)),
        compiler_params=pltpu.CompilerParams(
            dimension_semantics=("parallel", "parallel"),
            vmem_limit_bytes=vmem_limit),
    )(*args)
    return out[:M]


# ------------------------------ JAX glue ---------------------------------- #

def _im2col(x_nhwc, kh, kw, stride, padding):
    """(N*Hout*Wout, kh*kw*C) patches, taps folded into the last dim (unpadded C)."""
    N, H, W, C = x_nhwc.shape
    xp = jnp.pad(x_nhwc, ((0, 0), (padding, padding), (padding, padding), (0, 0)))
    Hout = (H + 2 * padding - kh) // stride + 1
    Wout = (W + 2 * padding - kw) // stride + 1
    taps = []
    for dy in range(kh):
        for dx in range(kw):
            taps.append(xp[:, dy:dy + stride * Hout:stride,
                           dx:dx + stride * Wout:stride, :])
    p = jnp.stack(taps, axis=3)                       # (N, Hout, Wout, K, C)
    return p.reshape(N * Hout * Wout, kh * kw * C), Hout, Wout


def _pad_last(a, n):
    return jnp.pad(a, ((0, 0), (0, n - a.shape[-1])))


def _fold_bn_into_w(w_hwio, bn, kc_p, cout_p, eps=1e-5):
    """Fold BN scale into the (flattened) weights; return (w2d_padded, bias_padded)."""
    kh, kw, cin, cout = w_hwio.shape
    scale = bn["gamma"] / jnp.sqrt(bn["var"] + eps)           # (cout,)
    bias = bn["beta"] - bn["mean"] * scale                    # (cout,)
    w2d = w_hwio.reshape(kh * kw * cin, cout) * scale[None, :]  # fold scale (f32)
    w2d = jnp.pad(w2d, ((0, kc_p - kh * kw * cin), (0, cout_p - cout)))
    bias = jnp.pad(bias, (0, cout_p - cout)).reshape(1, -1)
    return w2d, bias


def resnet_basic_block(x_nchw, params, *, stride):
    x = jnp.transpose(x_nchw, (0, 2, 3, 1)).astype(jnp.float32)  # NCHW -> NHWC
    N, H, W, Cin = x.shape
    Cout = params["w1"].shape[-1]
    Cout_p = _round_up(Cout, 128)

    # conv1 (3x3, stride, pad=1) + bn1 + relu   (no residual input)
    p1, H1, W1 = _im2col(x, 3, 3, stride, 1)                 # (M1, 9*Cin)
    M1 = N * H1 * W1
    KC1 = _round_up(9 * Cin, 128)
    p1 = _pad_last(p1, KC1)
    w1, b1 = _fold_bn_into_w(params["w1"], params["bn1"], KC1, Cout_p)
    out1 = fused_matmul_bn(p1, w1, b1, None, apply_relu=True,
                           out_dtype=jnp.bfloat16)           # (M1, Cout_p) bf16
    out1_nhwc = out1[:, :Cout].reshape(N, H1, W1, Cout)

    # shortcut: identity, or 1x1 conv (stride) + BN (no relu, no residual)
    if stride != 1 or Cin != Cout:
        ps, _, _ = _im2col(x, 1, 1, stride, 0)               # (M1, Cin)
        KCs = _round_up(Cin, 128)
        ps = _pad_last(ps, KCs)
        ws, bs = _fold_bn_into_w(params["ws"], params["bns"], KCs, Cout_p)
        shortcut = fused_matmul_bn(ps, ws, bs, None, apply_relu=False,
                                   out_dtype=jnp.bfloat16)   # (M1, Cout_p)
    else:
        shortcut = _pad_last(x.reshape(M1, Cin), Cout_p).astype(jnp.bfloat16)

    # conv2 (3x3, stride 1, pad=1) + bn2 + residual add + relu
    p2, _, _ = _im2col(out1_nhwc, 3, 3, 1, 1)                # (M1, 9*Cout) bf16
    KC2 = _round_up(9 * Cout, 128)
    p2 = _pad_last(p2, KC2)
    w2, b2 = _fold_bn_into_w(params["w2"], params["bn2"], KC2, Cout_p)
    out2 = fused_matmul_bn(p2, w2, b2, shortcut, apply_relu=True,
                           out_dtype=jnp.float32)

    out = out2[:, :Cout].reshape(N, H1, W1, Cout)
    return jnp.transpose(out, (0, 3, 1, 2))                  # NHWC -> NCHW


# ------------------------ deterministic param init ------------------------ #

def _bn_params(key, c):
    k1, k2, k3, k4 = jax.random.split(key, 4)
    return dict(
        gamma=1.0 + 0.1 * jax.random.normal(k1, (c,), jnp.float32),
        beta=0.1 * jax.random.normal(k2, (c,), jnp.float32),
        mean=0.05 * jax.random.normal(k3, (c,), jnp.float32),
        var=1.0 + 0.1 * jnp.abs(jax.random.normal(k4, (c,), jnp.float32)),
    )


def init_basic_block_params(key, in_channels, out_channels, stride):
    k1, k2, k3, k4, k5, k6 = jax.random.split(key, 6)
    p = {
        # weights stored HWIO (KH, KW, Cin, Cout)
        "w1": jax.random.normal(k1, (3, 3, in_channels, out_channels),
                                jnp.float32) / np.sqrt(9 * in_channels),
        "bn1": _bn_params(k2, out_channels),
        "w2": jax.random.normal(k3, (3, 3, out_channels, out_channels),
                                jnp.float32) / np.sqrt(9 * out_channels),
        "bn2": _bn_params(k4, out_channels),
    }
    if stride != 1 or in_channels != out_channels:
        p["ws"] = jax.random.normal(k5, (1, 1, in_channels, out_channels),
                                    jnp.float32) / np.sqrt(in_channels)
        p["bns"] = _bn_params(k6, out_channels)
    return p


# ----------------------------- pure-JAX reference -------------------------- #

def _conv_ref(x_nhwc, w_hwio, stride, padding):
    return lax.conv_general_dilated(
        x_nhwc, w_hwio, window_strides=(stride, stride),
        padding=[(padding, padding), (padding, padding)],
        dimension_numbers=("NHWC", "HWIO", "NHWC"),
        precision=lax.Precision.HIGHEST)


def _bn_ref(x, bn, eps=1e-5):
    return (x - bn["mean"]) / jnp.sqrt(bn["var"] + eps) * bn["gamma"] + bn["beta"]


def resnet_basic_block_ref(x_nchw, params, *, stride):
    x = jnp.transpose(x_nchw, (0, 2, 3, 1)).astype(jnp.float32)
    Cin = x.shape[-1]
    Cout = params["w1"].shape[-1]
    out = jax.nn.relu(_bn_ref(_conv_ref(x, params["w1"], stride, 1), params["bn1"]))
    out = _bn_ref(_conv_ref(out, params["w2"], 1, 1), params["bn2"])
    if stride != 1 or Cin != Cout:
        sc = _bn_ref(_conv_ref(x, params["ws"], stride, 0), params["bns"])
    else:
        sc = x
    out = jax.nn.relu(out + sc)
    return jnp.transpose(out, (0, 3, 1, 2))


# --------------------------------- main ----------------------------------- #

if __name__ == "__main__":
    key = jax.random.PRNGKey(0)
    kx1, kx2, kx3, kx4, kx5, kp1, kp2, kp3, kp4, kp5 = jax.random.split(key, 10)

    # bf16 inputs + f32 accumulation -> loosened tolerances (per perf review).
    def check(x, params, stride, rtol=2e-2, atol=5e-2):
        fn = jax.jit(functools.partial(resnet_basic_block, stride=stride))
        y = jax.block_until_ready(fn(x, params))
        y_ref = resnet_basic_block_ref(x, params, stride=stride)
        np.testing.assert_allclose(np.asarray(y), np.asarray(y_ref),
                                   rtol=rtol, atol=atol)

    # Case 1: identity shortcut (in == out, stride 1), x: (N=2, C=8, H=16, W=16)
    x1 = jax.random.normal(kx1, (2, 8, 16, 16), jnp.float32)
    params1 = init_basic_block_params(kp1, 8, 8, 1)
    check(x1, params1, stride=1)

    # Case 2: projection shortcut (in != out, stride 2), x: (2, 4, 16, 16)
    x2 = jax.random.normal(kx2, (2, 4, 16, 16), jnp.float32)
    params2 = init_basic_block_params(kp2, 4, 8, 2)
    check(x2, params2, stride=2)

    # Case 3: larger spatial size so the M grid axis has >1 tile (M = 2048)
    x3 = jax.random.normal(kx3, (2, 8, 32, 32), jnp.float32)
    params3 = init_basic_block_params(kp3, 8, 8, 1)
    check(x3, params3, stride=1)

    # Case 4: realistic channel count, identity shortcut (64 -> 64, stride 1);
    # exercises KC = round_up(576, 128) = 640 tap-folded contraction.
    x4 = jax.random.normal(kx4, (2, 64, 16, 16), jnp.float32)
    params4 = init_basic_block_params(kp4, 64, 64, 1)
    check(x4, params4, stride=1)

    # Case 5: realistic projection shortcut (64 -> 128, stride 2).
    x5 = jax.random.normal(kx5, (2, 64, 16, 16), jnp.float32)
    params5 = init_basic_block_params(kp5, 64, 128, 2)
    check(x5, params5, stride=2)

    print("KERNEL_OK")
</pallas_src>

<mosaic_0001>
module attributes {stable_mosaic.version = 11 : i64} {
  func.func @_fused_matmul_bn_kernel(%arg0: i32, %arg1: i32, %arg2: memref<512x128xbf16, #tpu.memory_space<vmem>>, %arg3: memref<128x128xbf16, #tpu.memory_space<vmem>>, %arg4: memref<1x128xf32, #tpu.memory_space<vmem>>, %arg5: memref<512x128xbf16, #tpu.memory_space<vmem>>) attributes {dimension_semantics = [#tpu.dimension_semantics<parallel>, #tpu.dimension_semantics<parallel>], iteration_bounds = array<i64: 1, 1>, scalar_prefetch = 0 : i64, scratch_operands = 0 : i64, tpu.core_type = #tpu.core_type<tc>, window_params = [{transform_indices = @transform_0, window_bounds = array<i64: 512, 128>}, {transform_indices = @transform_1, window_bounds = array<i64: 128, 128>}, {transform_indices = @transform_2, window_bounds = array<i64: 1, 128>}, {transform_indices = @transform_3, window_bounds = array<i64: 512, 128>}]} {
    %c0 = arith.constant 0 : index
    %c0_0 = arith.constant 0 : index
    %0 = vector.load %arg2[%c0, %c0_0] : memref<512x128xbf16, #tpu.memory_space<vmem>>, vector<512x128xbf16>
    %c0_1 = arith.constant 0 : index
    %c0_2 = arith.constant 0 : index
    %1 = vector.load %arg3[%c0_1, %c0_2] : memref<128x128xbf16, #tpu.memory_space<vmem>>, vector<128x128xbf16>
    %cst = arith.constant dense<0.000000e+00> : vector<512x128xf32>
    %2 = tpu.matmul %0, %1, %cst {dimension_numbers = #tpu.dot_dimension_numbers<[1], [0], [0], [1], [0, 0, 1, 1], [], []>} : vector<512x128xbf16>, vector<128x128xbf16>, vector<512x128xf32> -> vector<512x128xf32>
    %c0_3 = arith.constant 0 : index
    %c0_4 = arith.constant 0 : index
    %3 = vector.load %arg4[%c0_3, %c0_4] : memref<1x128xf32, #tpu.memory_space<vmem>>, vector<1x128xf32>
    %4 = vector.broadcast %3 : vector<1x128xf32> to vector<512x128xf32>
    %5 = arith.addf %2, %4 : vector<512x128xf32>
    %cst_5 = arith.constant 0.000000e+00 : f32
    %6 = vector.broadcast %cst_5 : f32 to vector<512x128xf32>
    %7 = arith.maximumf %5, %6 : vector<512x128xf32>
    %8 = arith.truncf %7 : vector<512x128xf32> to vector<512x128xbf16>
    %c0_6 = arith.constant 0 : index
    %c0_7 = arith.constant 0 : index
    %9 = vector.load %arg5[%c0_6, %c0_7] : memref<512x128xbf16, #tpu.memory_space<vmem>>, vector<512x128xbf16>
    tpu.vector_store %arg5[%c0_6, %c0_7], %8 {strides = array<i32>} : memref<512x128xbf16, #tpu.memory_space<vmem>>, vector<512x128xbf16>,
    return
  }
  func.func @transform_0(%arg0: i32, %arg1: i32) -> (i32, i32) {
    %c0_i32 = arith.constant 0 : i32
    %c0_i32_0 = arith.constant 0 : i32
    return %arg0, %c0_i32 : i32, i32
  }
  func.func @transform_1(%arg0: i32, %arg1: i32) -> (i32, i32) {
    %c0_i32 = arith.constant 0 : i32
    %c0_i32_0 = arith.constant 0 : i32
    return %c0_i32, %arg1 : i32, i32
  }
  func.func @transform_2(%arg0: i32, %arg1: i32) -> (i32, i32) {
    %c0_i32 = arith.constant 0 : i32
    %c0_i32_0 = arith.constant 0 : i32
    return %c0_i32, %arg1 : i32, i32
  }
  func.func @transform_3(%arg0: i32, %arg1: i32) -> (i32, i32) {
    %c0_i32 = arith.constant 0 : i32
    return %arg0, %arg1 : i32, i32
  }
}

module attributes {stable_mosaic.version = 11 : i64} {
  func.func @_fused_matmul_bn_kernel(%arg0: i32, %arg1: i32, %arg2: memref<512x128xbf16, #tpu.memory_space<vmem>>, %arg3: memref<128x128xbf16, #tpu.memory_space<vmem>>, %arg4: memref<1x128xf32, #tpu.memory_space<vmem>>, %arg5: memref<512x128xbf16, #tpu.memory_space<vmem>>, %arg6: memref<512x128xf32, #tpu.memory_space<vmem>>) attributes {dimension_semantics = [#tpu.dimension_semantics<parallel>, #tpu.dimension_semantics<parallel>], iteration_bounds = array<i64: 1, 1>, scalar_prefetch = 0 : i64, scratch_operands = 0 : i64, tpu.core_type = #tpu.core_type<tc>, window_params = [{transform_indices = @transform_0, window_bounds = array<i64: 512, 128>}, {transform_indices = @transform_1, window_bounds = array<i64: 128, 128>}, {transform_indices = @transform_2, window_bounds = array<i64: 1, 128>}, {transform_indices = @transform_3, window_bounds = array<i64: 512, 128>}, {transform_indices = @transform_4, window_bounds = array<i64: 512, 128>}]} {
    %c0 = arith.constant 0 : index
    %c0_0 = arith.constant 0 : index
    %0 = vector.load %arg2[%c0, %c0_0] : memref<512x128xbf16, #tpu.memory_space<vmem>>, vector<512x128xbf16>
    %c0_1 = arith.constant 0 : index
    %c0_2 = arith.constant 0 : index
    %1 = vector.load %arg3[%c0_1, %c0_2] : memref<128x128xbf16, #tpu.memory_space<vmem>>, vector<128x128xbf16>
    %cst = arith.constant dense<0.000000e+00> : vector<512x128xf32>
    %2 = tpu.matmul %0, %1, %cst {dimension_numbers = #tpu.dot_dimension_numbers<[1], [0], [0], [1], [0, 0, 1, 1], [], []>} : vector<512x128xbf16>, vector<128x128xbf16>, vector<512x128xf32> -> vector<512x128xf32>
    %c0_3 = arith.constant 0 : index
    %c0_4 = arith.constant 0 : index
    %3 = vector.load %arg4[%c0_3, %c0_4] : memref<1x128xf32, #tpu.memory_space<vmem>>, vector<1x128xf32>
    %4 = vector.broadcast %3 : vector<1x128xf32> to vector<512x128xf32>
    %5 = arith.addf %2, %4 : vector<512x128xf32>
    %c0_5 = arith.constant 0 : index
    %c0_6 = arith.constant 0 : index
    %6 = vector.load %arg5[%c0_5, %c0_6] : memref<512x128xbf16, #tpu.memory_space<vmem>>, vector<512x128xbf16>
    %7 = arith.extf %6 : vector<512x128xbf16> to vector<512x128xf32>
    %8 = arith.addf %5, %7 : vector<512x128xf32>
    %cst_7 = arith.constant 0.000000e+00 : f32
    %9 = vector.broadcast %cst_7 : f32 to vector<512x128xf32>
    %10 = arith.maximumf %8, %9 : vector<512x128xf32>
    %c0_8 = arith.constant 0 : index
    %c0_9 = arith.constant 0 : index
    %11 = vector.load %arg6[%c0_8, %c0_9] : memref<512x128xf32, #tpu.memory_space<vmem>>, vector<512x128xf32>
    tpu.vector_store %arg6[%c0_8, %c0_9], %10 {strides = array<i32>} : memref<512x128xf32, #tpu.memory_space<vmem>>, vector<512x128xf32>,
    return
  }
  func.func @transform_0(%arg0: i32, %arg1: i32) -> (i32, i32) {
    %c0_i32 = arith.constant 0 : i32
    %c0_i32_0 = arith.constant 0 : i32
    return %arg0, %c0_i32 : i32, i32
  }
  func.func @transform_1(%arg0: i32, %arg1: i32) -> (i32, i32) {
    %c0_i32 = arith.constant 0 : i32
    %c0_i32_0 = arith.constant 0 : i32
    return %c0_i32, %arg1 : i32, i32
  }
  func.func @transform_2(%arg0: i32, %arg1: i32) -> (i32, i32) {
    %c0_i32 = arith.constant 0 : i32
    %c0_i32_0 = arith.constant 0 : i32
    return %c0_i32, %arg1 : i32, i32
  }
  func.func @transform_3(%arg0: i32, %arg1: i32) -> (i32, i32) {
    %c0_i32 = arith.constant 0 : i32
    return %arg0, %arg1 : i32, i32
  }
  func.func @transform_4(%arg0: i32, %arg1: i32) -> (i32, i32) {
    %c0_i32 = arith.constant 0 : i32
    return %arg0, %arg1 : i32, i32
  }
}

</mosaic_0001>

<bundles_post_ra>
// kernel: resnet_basic_block.2
= control target key start
LH: loop header
LB: loop body
LE: loop exit
PB: predicated region body
PF: predicated region fallthrough
CT: control target
= control target key end

     0   :  { %s1860_s1 = inlined_call_operand.vmem [shape: bf16[128,128], index: 1, kind: input, shape index: {}]   ;;  %s1861_s0 = inlined_call_operand.vmem [shape: bf16[512,128], index: 0, kind: input, shape index: {}]   ;;  %s1862_s2 = inlined_call_operand.vmem [shape: f32[1,128], index: 2, kind: input, shape index: {}]   ;;  %s1863_s3 = inlined_call_operand.vmem [shape: bf16[512,128], index: 3, kind: output, shape index: {}]  }
   0x1   :  { %v1515_v0 = vld [vmem:[%s1860_s1 + $0x38] sm:$0xff]   ;;  %v1516_v1 = vld [vmem:[%s1860_s1 + $0x30] sm:$0xff]   ;;  %v1517_v2 = vld [vmem:[%s1860_s1 + $0x28] sm:$0xff]  }
   0x2   :  { %1419 = vmatprep.subr.bf16.mxu0 %v1515_v0  ;;  %1499 = vmatprep.subr.bf16.mxu1 %v1515_v0  ;;  %v1518_v3 = vld [vmem:[%s1860_s1 + $0x20] sm:$0xff]   ;;  %v1519_v6 = vld [vmem:[%s1860_s1 + $0x18] sm:$0xff]   ;;  %v1520_v7 = vld [vmem:[%s1860_s1 + $0x10] sm:$0xff]  }
   0x3   :  { %1420 = vmatpush3.bf16.msra.mxu0 %v1515_v0  ;;  %1507 = vmatpush3.bf16.msra.mxu1 %v1515_v0  ;;  %v1523_v4 = vld [vmem:[%s1861_s0] sm:$0xff]   ;;  %v1521_v8 = vld [vmem:[%s1860_s1 + $0x8] sm:$0xff]   ;;  %v1527_v12 = vld [vmem:[%s1861_s0 + $0x10] sm:$0xff]  }
   0x4   :  { %1421 = vmatprep.subr.bf16.mxu0 %v1516_v1  ;;  %1500 = vmatprep.subr.bf16.mxu1 %v1516_v1  ;;  %v1524_v5 = vld [vmem:[%s1861_s0 + $0x80] sm:$0xff]   ;;  %v1525_v10 = vld [vmem:[%s1861_s0 + $0x8] sm:$0xff]   ;;  %v1528_v13 = vld [vmem:[%s1861_s0 + $0x90] sm:$0xff]  }
   0x5   :  { %1435 = vmatprep.mubr.bf16.mxu0 %v1523_v4  ;;  %1467 = vmatprep.mubr.bf16.mxu1 %v1524_v5  ;;  %v1522_v9 = vld [vmem:[%s1860_s1] sm:$0xff]   ;;  %v1526_v11 = vld [vmem:[%s1861_s0 + $0x88] sm:$0xff]   ;;  %v1529_v14 = vld [vmem:[%s1861_s0 + $0x18] sm:$0xff]  }
   0x6   :  { %v1530_v15 = vld [vmem:[%s1861_s0 + $0x98] sm:$0xff]   ;;  %v1531_v16 = vld [vmem:[%s1861_s0 + $0x20] sm:$0xff]   ;;  %v1533_v18 = vld [vmem:[%s1861_s0 + $0x28] sm:$0xff]  }
   0x7   :  { %1422 = vmatpush3.bf16.msra.mxu0 %v1516_v1  ;;  %1508 = vmatpush3.bf16.msra.mxu1 %v1516_v1  ;;  %v1532_v17 = vld [vmem:[%s1861_s0 + $0xa0] sm:$0xff]   ;;  %v1534_v19 = vld [vmem:[%s1861_s0 + $0xa8] sm:$0xff]   ;;  %v1535_v20 = vld [vmem:[%s1861_s0 + $0x30] sm:$0xff]  }
   0x8   :  { %1423 = vmatprep.subr.bf16.mxu0 %v1517_v2  ;;  %1501 = vmatprep.subr.bf16.mxu1 %v1517_v2  ;;  %v1536_v21 = vld [vmem:[%s1861_s0 + $0xb0] sm:$0xff]   ;;  %v1537_v22 = vld [vmem:[%s1861_s0 + $0x38] sm:$0xff]   ;;  %v1539_v24 = vld [vmem:[%s1861_s0 + $0x40] sm:$0xff]  }
   0x9   :  { %v1538_v23 = vld [vmem:[%s1861_s0 + $0xb8] sm:$0xff]   ;;  %v1540_v25 = vld [vmem:[%s1861_s0 + $0xc0] sm:$0xff]   ;;  %v1541_v26 = vld [vmem:[%s1861_s0 + $0x48] sm:$0xff]  }
   0xa   :  { %v1542_v27 = vld [vmem:[%s1861_s0 + $0xc8] sm:$0xff]   ;;  %v1543_v28 = vld [vmem:[%s1861_s0 + $0x50] sm:$0xff]   ;;  %v1545_v30 = vld [vmem:[%s1861_s0 + $0x58] sm:$0xff]  }
   0xb   :  { %1424 = vmatpush3.bf16.msra.mxu0 %v1517_v2  ;;  %1509 = vmatpush3.bf16.msra.mxu1 %v1517_v2  ;;  %v1544_v29 = vld [vmem:[%s1861_s0 + $0xd0] sm:$0xff]   ;;  %v1546_v31 = vld [vmem:[%s1861_s0 + $0xd8] sm:$0xff]   ;;  %v1547_v32 = vld [vmem:[%s1861_s0 + $0x60] sm:$0xff]  }
   0xc   :  { %1425 = vmatprep.subr.bf16.mxu0 %v1518_v3  ;;  %1502 = vmatprep.subr.bf16.mxu1 %v1518_v3  ;;  %v1548_v33 = vld [vmem:[%s1861_s0 + $0xe0] sm:$0xff]   ;;  %v1549_v34 = vld [vmem:[%s1861_s0 + $0x68] sm:$0xff]   ;;  %v1551_v36 = vld [vmem:[%s1861_s0 + $0x70] sm:$0xff]  }
   0xd   :  { %v1550_v35 = vld [vmem:[%s1861_s0 + $0xe8] sm:$0xff]   ;;  %v1552_v37 = vld [vmem:[%s1861_s0 + $0xf0] sm:$0xff]   ;;  %v1553_v38 = vld [vmem:[%s1861_s0 + $0x78] sm:$0xff]  }
   0xe   :  { %v1554_v39 = vld [vmem:[%s1861_s0 + $0xf8] sm:$0xff]   ;;  %v1698_v40 = vld [vmem:[%s1862_s2] ss:$0 sm:$0xff] }
   0xf   :  { %1426 = vmatpush3.bf16.msra.mxu0 %v1518_v3  ;;  %1510 = vmatpush3.bf16.msra.mxu1 %v1518_v3 }
  0x10   :  { %1427 = vmatprep.subr.bf16.mxu0 %v1519_v6  ;;  %1503 = vmatprep.subr.bf16.mxu1 %v1519_v6 }
  0x13   :  { %1428 = vmatpush3.bf16.msra.mxu0 %v1519_v6  ;;  %1511 = vmatpush3.bf16.msra.mxu1 %v1519_v6 }
  0x14   :  { %1429 = vmatprep.subr.bf16.mxu0 %v1520_v7  ;;  %1504 = vmatprep.subr.bf16.mxu1 %v1520_v7 }
  0x17   :  { %1430 = vmatpush3.bf16.msra.mxu0 %v1520_v7  ;;  %1512 = vmatpush3.bf16.msra.mxu1 %v1520_v7 }
  0x18   :  { %1431 = vmatprep.subr.bf16.mxu0 %v1521_v8  ;;  %1505 = vmatprep.subr.bf16.mxu1 %v1521_v8 }
  0x1b   :  { %1432 = vmatpush3.bf16.msra.mxu0 %v1521_v8  ;;  %1513 = vmatpush3.bf16.msra.mxu1 %v1521_v8 }
  0x1c   :  { %1433 = vmatprep.subr.bf16.mxu0 %v1522_v9  ;;  %1506 = vmatprep.subr.bf16.mxu1 %v1522_v9 }
  0x1f   :  { %1434 = vmatpush3.bf16.msra.mxu0 %v1522_v9  ;;  %1514 = vmatpush3.bf16.msra.mxu1 %v1522_v9 }
  0x22   :  { %1436 = vmatmul.mubr.bf16.vlgmr.msra.gmra.mxu0 %v1525_v10  ;;  %1468 = vmatmul.mubr.bf16.vlgmr.msra.gmra.mxu1 %v1526_v11 }
  0x23   :  { %1439 = vmatprep.mubr.bf16.mxu0 %v1527_v12  ;;  %1471 = vmatprep.mubr.bf16.mxu1 %v1528_v13 }
  0x2a   :  { %1440 = vmatmul.mubr.bf16.gmra.mxu0 %v1529_v14  ;;  %1472 = vmatmul.mubr.bf16.gmra.mxu1 %v1530_v15 }
  0x2b   :  { %1443 = vmatprep.mubr.bf16.mxu0 %v1531_v16  ;;  %1475 = vmatprep.mubr.bf16.mxu1 %v1532_v17 }
  0x32   :  { %1444 = vmatmul.mubr.bf16.gmra.mxu0 %v1533_v18  ;;  %1476 = vmatmul.mubr.bf16.gmra.mxu1 %v1534_v19 }
  0x33   :  { %1447 = vmatprep.mubr.bf16.mxu0 %v1535_v20  ;;  %1479 = vmatprep.mubr.bf16.mxu1 %v1536_v21 }
  0x3a   :  { %1448 = vmatmul.mubr.bf16.gmra.mxu0 %v1537_v22  ;;  %1480 = vmatmul.mubr.bf16.gmra.mxu1 %v1538_v23 }
  0x3b   :  { %1451 = vmatprep.mubr.bf16.mxu0 %v1539_v24  ;;  %1483 = vmatprep.mubr.bf16.mxu1 %v1540_v25 }
  0x42   :  { %1452 = vmatmul.mubr.bf16.gmra.mxu0 %v1541_v26  ;;  %1484 = vmatmul.mubr.bf16.gmra.mxu1 %v1542_v27 }
  0x43   :  { %1455 = vmatprep.mubr.bf16.mxu0 %v1543_v28  ;;  %1487 = vmatprep.mubr.bf16.mxu1 %v1544_v29 }
  0x4a   :  { %1456 = vmatmul.mubr.bf16.gmra.mxu0 %v1545_v30  ;;  %1488 = vmatmul.mubr.bf16.gmra.mxu1 %v1546_v31 }
  0x4b   :  { %1459 = vmatprep.mubr.bf16.mxu0 %v1547_v32  ;;  %1491 = vmatprep.mubr.bf16.mxu1 %v1548_v33 }
  0x52   :  { %1460 = vmatmul.mubr.bf16.gmra.mxu0 %v1549_v34  ;;  %1492 = vmatmul.mubr.bf16.gmra.mxu1 %v1550_v35 }
  0x53   :  { %1463 = vmatprep.mubr.bf16.mxu0 %v1551_v36  ;;  %1495 = vmatprep.mubr.bf16.mxu1 %v1552_v37 }
  0x5a   :  { %1464 = vmatmul.mubr.bf16.gmra.mxu0 %v1553_v38  ;;  %1496 = vmatmul.mubr.bf16.gmra.mxu1 %v1554_v39 }
  0xe2   :  { %v1437_v41 = vpop.f32.mrf.mxu0  ;;  %v1469_v42 = vpop.f32.mrf.mxu1 }
  0xe3   :  { %v385_v43 = vadd.f32 %v1437_v41, %v1698_v40  ;;  %v513_v44 = vadd.f32 %v1469_v42, %v1698_v40 }
  0xe4   :  { %v376_v45 = vpop.f32.mrf.mxu0  ;;  %v504_v46 = vpop.f32.mrf.mxu1 }
  0xe5   :  { %v377_v47 = vadd.f32 %v1698_v40, %v376_v45  ;;  %v505_v48 = vadd.f32 %v1698_v40, %v504_v46  ;;  %v633_v53 = vmax.f32 %v385_v43, 0.0  ;;  %v665_v54 = vmax.f32 %v513_v44, 0.0 }
  0xe6   :  { %v1438_v49 = vpop.f32.mrf.mxu0  ;;  %v1470_v50 = vpop.f32.mrf.mxu1 }
  0xe7   :  { %v388_v51 = vadd.f32 %v1438_v49, %v1698_v40  ;;  %v516_v52 = vadd.f32 %v1470_v50, %v1698_v40  ;;  %v631_v61 = vmax.f32 %v377_v47, 0.0  ;;  %v663_v62 = vmax.f32 %v505_v48, 0.0 }
  0xe8   :  { %v379_v55 = vpop.f32.mrf.mxu0  ;;  %v507_v56 = vpop.f32.mrf.mxu1 }
  0xe9   :  { %v634_v57 = vmax.f32 %v388_v51, 0.0  ;;  %v666_v58 = vmax.f32 %v516_v52, 0.0  ;;  %v380_v59 = vadd.f32 %v1698_v40, %v379_v55  ;;  %v508_v60 = vadd.f32 %v1698_v40, %v507_v56 }
  0xea   :  { %v1441_v63 = vpop.f32.mrf.mxu0  ;;  %v1473_v0 = vpop.f32.mrf.mxu1 }
  0xeb   :  { %v1196_v1 = vpack.c.bf16 %v634_v57, %v633_v53  ;;  %v1276_v2 = vpack.c.bf16 %v666_v58, %v665_v54  ;;  %v632_v3 = vmax.f32 %v380_v59, 0.0  ;;  %v664_v4 = vmax.f32 %v508_v60, 0.0 }
  0xec   :  { %v401_v5 = vadd.f32 %v1441_v63, %v1698_v40  ;;  %v529_v6 = vadd.f32 %v1473_v0, %v1698_v40  ;;  %v392_v7 = vpop.f32.mrf.mxu0  ;;  %v520_v8 = vpop.f32.mrf.mxu1 }
  0xed   :  { %1348 = vst [vmem:[%s1863_s3 + $0x8] sm:$0xff] %v1196_v1   ;;  %1364 = vst [vmem:[%s1863_s3 + $0x88] sm:$0xff] %v1276_v2   ;;  %v1191_v9 = vpack.c.bf16 %v632_v3, %v631_v61  ;;  %v1271_v10 = vpack.c.bf16 %v664_v4, %v663_v62  ;;  %v393_v11 = vadd.f32 %v1698_v40, %v392_v7 }
  0xee   :  { %v521_v12 = vadd.f32 %v1698_v40, %v520_v8  ;;  %v1442_v13 = vpop.f32.mrf.mxu0  ;;  %v1474_v14 = vpop.f32.mrf.mxu1  ;;  %v637_v17 = vmax.f32 %v401_v5, 0.0  ;;  %v669_v18 = vmax.f32 %v529_v6, 0.0 }
  0xef   :  { %1192 = vst [vmem:[%s1863_s3] sm:$0xff] %v1191_v9   ;;  %1363 = vst [vmem:[%s1863_s3 + $0x80] sm:$0xff] %v1271_v10   ;;  %v404_v15 = vadd.f32 %v1442_v13, %v1698_v40  ;;  %v532_v16 = vadd.f32 %v1474_v14, %v1698_v40  ;;  %v635_v25 = vmax.f32 %v393_v11, 0.0 }
  0xf0   :  { %v395_v19 = vpop.f32.mrf.mxu0  ;;  %v523_v20 = vpop.f32.mrf.mxu1  ;;  %v667_v26 = vmax.f32 %v521_v12, 0.0 }
  0xf1   :  { %v638_v21 = vmax.f32 %v404_v15, 0.0  ;;  %v670_v22 = vmax.f32 %v532_v16, 0.0  ;;  %v396_v23 = vadd.f32 %v1698_v40, %v395_v19  ;;  %v524_v24 = vadd.f32 %v1698_v40, %v523_v20 }
  0xf2   :  { %v1445_v27 = vpop.f32.mrf.mxu0  ;;  %v1477_v28 = vpop.f32.mrf.mxu1 }
  0xf3   :  { %v1206_v29 = vpack.c.bf16 %v638_v21, %v637_v17  ;;  %v1286_v30 = vpack.c.bf16 %v670_v22, %v669_v18  ;;  %v636_v31 = vmax.f32 %v396_v23, 0.0  ;;  %v668_v32 = vmax.f32 %v524_v24, 0.0 }
  0xf4   :  { %v417_v33 = vadd.f32 %v1445_v27, %v1698_v40  ;;  %v545_v34 = vadd.f32 %v1477_v28, %v1698_v40  ;;  %v408_v35 = vpop.f32.mrf.mxu0  ;;  %v536_v36 = vpop.f32.mrf.mxu1 }
  0xf5   :  { %1350 = vst [vmem:[%s1863_s3 + $0x18] sm:$0xff] %v1206_v29   ;;  %1366 = vst [vmem:[%s1863_s3 + $0x98] sm:$0xff] %v1286_v30   ;;  %v1201_v37 = vpack.c.bf16 %v636_v31, %v635_v25  ;;  %v1281_v38 = vpack.c.bf16 %v668_v32, %v667_v26  ;;  %v409_v39 = vadd.f32 %v1698_v40, %v408_v35 }
  0xf6   :  { %v537_v41 = vadd.f32 %v1698_v40, %v536_v36  ;;  %v1446_v42 = vpop.f32.mrf.mxu0  ;;  %v1478_v43 = vpop.f32.mrf.mxu1  ;;  %v641_v46 = vmax.f32 %v417_v33, 0.0  ;;  %v673_v47 = vmax.f32 %v545_v34, 0.0 }
  0xf7   :  { %1349 = vst [vmem:[%s1863_s3 + $0x10] sm:$0xff] %v1201_v37   ;;  %1365 = vst [vmem:[%s1863_s3 + $0x90] sm:$0xff] %v1281_v38   ;;  %v420_v44 = vadd.f32 %v1446_v42, %v1698_v40  ;;  %v548_v45 = vadd.f32 %v1478_v43, %v1698_v40  ;;  %v639_v54 = vmax.f32 %v409_v39, 0.0 }
  0xf8   :  { %v411_v48 = vpop.f32.mrf.mxu0  ;;  %v539_v49 = vpop.f32.mrf.mxu1  ;;  %v671_v55 = vmax.f32 %v537_v41, 0.0 }
  0xf9   :  { %v642_v50 = vmax.f32 %v420_v44, 0.0  ;;  %v674_v51 = vmax.f32 %v548_v45, 0.0  ;;  %v412_v52 = vadd.f32 %v1698_v40, %v411_v48  ;;  %v540_v53 = vadd.f32 %v1698_v40, %v539_v49 }
  0xfa   :  { %v1449_v56 = vpop.f32.mrf.mxu0  ;;  %v1481_v57 = vpop.f32.mrf.mxu1 }
  0xfb   :  { %v1216_v58 = vpack.c.bf16 %v642_v50, %v641_v46  ;;  %v1296_v59 = vpack.c.bf16 %v674_v51, %v673_v47  ;;  %v640_v60 = vmax.f32 %v412_v52, 0.0  ;;  %v672_v61 = vmax.f32 %v540_v53, 0.0 }
  0xfc   :  { %v433_v62 = vadd.f32 %v1449_v56, %v1698_v40  ;;  %v561_v63 = vadd.f32 %v1481_v57, %v1698_v40  ;;  %v424_v0 = vpop.f32.mrf.mxu0  ;;  %v552_v1 = vpop.f32.mrf.mxu1 }
  0xfd   :  { %1352 = vst [vmem:[%s1863_s3 + $0x28] sm:$0xff] %v1216_v58   ;;  %1368 = vst [vmem:[%s1863_s3 + $0xa8] sm:$0xff] %v1296_v59   ;;  %v1211_v2 = vpack.c.bf16 %v640_v60, %v639_v54  ;;  %v1291_v3 = vpack.c.bf16 %v672_v61, %v671_v55  ;;  %v425_v4 = vadd.f32 %v1698_v40, %v424_v0 }
  0xfe   :  { %v553_v5 = vadd.f32 %v1698_v40, %v552_v1  ;;  %v1450_v6 = vpop.f32.mrf.mxu0  ;;  %v1482_v7 = vpop.f32.mrf.mxu1  ;;  %v645_v10 = vmax.f32 %v433_v62, 0.0  ;;  %v677_v11 = vmax.f32 %v561_v63, 0.0 }
  0xff   :  { %1351 = vst [vmem:[%s1863_s3 + $0x20] sm:$0xff] %v1211_v2   ;;  %1367 = vst [vmem:[%s1863_s3 + $0xa0] sm:$0xff] %v1291_v3   ;;  %v436_v8 = vadd.f32 %v1450_v6, %v1698_v40  ;;  %v564_v9 = vadd.f32 %v1482_v7, %v1698_v40  ;;  %v643_v18 = vmax.f32 %v425_v4, 0.0 }
 0x100   :  { %v427_v12 = vpop.f32.mrf.mxu0  ;;  %v555_v13 = vpop.f32.mrf.mxu1  ;;  %v675_v19 = vmax.f32 %v553_v5, 0.0 }
 0x101   :  { %v646_v14 = vmax.f32 %v436_v8, 0.0  ;;  %v678_v15 = vmax.f32 %v564_v9, 0.0  ;;  %v428_v16 = vadd.f32 %v1698_v40, %v427_v12  ;;  %v556_v17 = vadd.f32 %v1698_v40, %v555_v13 }
 0x102   :  { %v1453_v20 = vpop.f32.mrf.mxu0  ;;  %v1485_v21 = vpop.f32.mrf.mxu1 }
 0x103   :  { %v1226_v22 = vpack.c.bf16 %v646_v14, %v645_v10  ;;  %v1306_v23 = vpack.c.bf16 %v678_v15, %v677_v11  ;;  %v644_v24 = vmax.f32 %v428_v16, 0.0  ;;  %v676_v25 = vmax.f32 %v556_v17, 0.0 }
 0x104   :  { %v449_v26 = vadd.f32 %v1453_v20, %v1698_v40  ;;  %v577_v27 = vadd.f32 %v1485_v21, %v1698_v40  ;;  %v440_v28 = vpop.f32.mrf.mxu0  ;;  %v568_v29 = vpop.f32.mrf.mxu1 }
 0x105   :  { %1354 = vst [vmem:[%s1863_s3 + $0x38] sm:$0xff] %v1226_v22   ;;  %1370 = vst [vmem:[%s1863_s3 + $0xb8] sm:$0xff] %v1306_v23   ;;  %v1221_v30 = vpack.c.bf16 %v644_v24, %v643_v18  ;;  %v1301_v31 = vpack.c.bf16 %v676_v25, %v675_v19  ;;  %v441_v32 = vadd.f32 %v1698_v40, %v440_v28 }
 0x106   :  { %v569_v33 = vadd.f32 %v1698_v40, %v568_v29  ;;  %v1454_v34 = vpop.f32.mrf.mxu0  ;;  %v1486_v35 = vpop.f32.mrf.mxu1  ;;  %v649_v38 = vmax.f32 %v449_v26, 0.0  ;;  %v681_v39 = vmax.f32 %v577_v27, 0.0 }
 0x107   :  { %1353 = vst [vmem:[%s1863_s3 + $0x30] sm:$0xff] %v1221_v30   ;;  %1369 = vst [vmem:[%s1863_s3 + $0xb0] sm:$0xff] %v1301_v31   ;;  %v452_v36 = vadd.f32 %v1454_v34, %v1698_v40  ;;  %v580_v37 = vadd.f32 %v1486_v35, %v1698_v40  ;;  %v647_v47 = vmax.f32 %v441_v32, 0.0 }
 0x108   :  { %v443_v41 = vpop.f32.mrf.mxu0  ;;  %v571_v42 = vpop.f32.mrf.mxu1  ;;  %v679_v48 = vmax.f32 %v569_v33, 0.0 }
 0x109   :  { %v650_v43 = vmax.f32 %v452_v36, 0.0  ;;  %v682_v44 = vmax.f32 %v580_v37, 0.0  ;;  %v444_v45 = vadd.f32 %v1698_v40, %v443_v41  ;;  %v572_v46 = vadd.f32 %v1698_v40, %v571_v42 }
 0x10a   :  { %v1457_v49 = vpop.f32.mrf.mxu0  ;;  %v1489_v50 = vpop.f32.mrf.mxu1 }
 0x10b   :  { %v1236_v51 = vpack.c.bf16 %v650_v43, %v649_v38  ;;  %v1316_v52 = vpack.c.bf16 %v682_v44, %v681_v39  ;;  %v648_v53 = vmax.f32 %v444_v45, 0.0  ;;  %v680_v54 = vmax.f32 %v572_v46, 0.0 }
 0x10c   :  { %v465_v55 = vadd.f32 %v1457_v49, %v1698_v40  ;;  %v593_v56 = vadd.f32 %v1489_v50, %v1698_v40  ;;  %v456_v57 = vpop.f32.mrf.mxu0  ;;  %v584_v58 = vpop.f32.mrf.mxu1 }
 0x10d   :  { %1356 = vst [vmem:[%s1863_s3 + $0x48] sm:$0xff] %v1236_v51   ;;  %1372 = vst [vmem:[%s1863_s3 + $0xc8] sm:$0xff] %v1316_v52   ;;  %v1231_v59 = vpack.c.bf16 %v648_v53, %v647_v47  ;;  %v1311_v60 = vpack.c.bf16 %v680_v54, %v679_v48  ;;  %v457_v61 = vadd.f32 %v1698_v40, %v456_v57 }
 0x10e   :  { %v585_v62 = vadd.f32 %v1698_v40, %v584_v58  ;;  %v1458_v63 = vpop.f32.mrf.mxu0  ;;  %v1490_v0 = vpop.f32.mrf.mxu1  ;;  %v653_v3 = vmax.f32 %v465_v55, 0.0  ;;  %v685_v4 = vmax.f32 %v593_v56, 0.0 }
 0x10f   :  { %1355 = vst [vmem:[%s1863_s3 + $0x40] sm:$0xff] %v1231_v59   ;;  %1371 = vst [vmem:[%s1863_s3 + $0xc0] sm:$0xff] %v1311_v60   ;;  %v468_v1 = vadd.f32 %v1458_v63, %v1698_v40  ;;  %v596_v2 = vadd.f32 %v1490_v0, %v1698_v40  ;;  %v651_v11 = vmax.f32 %v457_v61, 0.0 }
 0x110   :  { %v459_v5 = vpop.f32.mrf.mxu0  ;;  %v587_v6 = vpop.f32.mrf.mxu1  ;;  %v683_v12 = vmax.f32 %v585_v62, 0.0 }
 0x111   :  { %v654_v7 = vmax.f32 %v468_v1, 0.0  ;;  %v686_v8 = vmax.f32 %v596_v2, 0.0  ;;  %v460_v9 = vadd.f32 %v1698_v40, %v459_v5  ;;  %v588_v10 = vadd.f32 %v1698_v40, %v587_v6 }
 0x112   :  { %v1461_v13 = vpop.f32.mrf.mxu0  ;;  %v1493_v14 = vpop.f32.mrf.mxu1 }
 0x113   :  { %v1246_v15 = vpack.c.bf16 %v654_v7, %v653_v3  ;;  %v1326_v16 = vpack.c.bf16 %v686_v8, %v685_v4  ;;  %v652_v17 = vmax.f32 %v460_v9, 0.0  ;;  %v684_v18 = vmax.f32 %v588_v10, 0.0 }
 0x114   :  { %v481_v19 = vadd.f32 %v1461_v13, %v1698_v40  ;;  %v609_v20 = vadd.f32 %v1493_v14, %v1698_v40  ;;  %v472_v21 = vpop.f32.mrf.mxu0  ;;  %v600_v22 = vpop.f32.mrf.mxu1 }
 0x115   :  { %1358 = vst [vmem:[%s1863_s3 + $0x58] sm:$0xff] %v1246_v15   ;;  %1374 = vst [vmem:[%s1863_s3 + $0xd8] sm:$0xff] %v1326_v16   ;;  %v1241_v23 = vpack.c.bf16 %v652_v17, %v651_v11  ;;  %v1321_v24 = vpack.c.bf16 %v684_v18, %v683_v12  ;;  %v473_v25 = vadd.f32 %v1698_v40, %v472_v21 }
 0x116   :  { %v601_v26 = vadd.f32 %v1698_v40, %v600_v22  ;;  %v1462_v27 = vpop.f32.mrf.mxu0  ;;  %v1494_v28 = vpop.f32.mrf.mxu1  ;;  %v657_v31 = vmax.f32 %v481_v19, 0.0  ;;  %v689_v32 = vmax.f32 %v609_v20, 0.0 }
 0x117   :  { %1357 = vst [vmem:[%s1863_s3 + $0x50] sm:$0xff] %v1241_v23   ;;  %1373 = vst [vmem:[%s1863_s3 + $0xd0] sm:$0xff] %v1321_v24   ;;  %v484_v29 = vadd.f32 %v1462_v27, %v1698_v40  ;;  %v612_v30 = vadd.f32 %v1494_v28, %v1698_v40  ;;  %v655_v39 = vmax.f32 %v473_v25, 0.0 }
 0x118   :  { %v475_v33 = vpop.f32.mrf.mxu0  ;;  %v603_v34 = vpop.f32.mrf.mxu1  ;;  %v687_v41 = vmax.f32 %v601_v26, 0.0 }
 0x119   :  { %v658_v35 = vmax.f32 %v484_v29, 0.0  ;;  %v690_v36 = vmax.f32 %v612_v30, 0.0  ;;  %v476_v37 = vadd.f32 %v1698_v40, %v475_v33  ;;  %v604_v38 = vadd.f32 %v1698_v40, %v603_v34 }
 0x11a   :  { %v1465_v42 = vpop.f32.mrf.mxu0  ;;  %v1497_v43 = vpop.f32.mrf.mxu1 }
 0x11b   :  { %v1256_v44 = vpack.c.bf16 %v658_v35, %v657_v31  ;;  %v1336_v45 = vpack.c.bf16 %v690_v36, %v689_v32  ;;  %v656_v46 = vmax.f32 %v476_v37, 0.0  ;;  %v688_v47 = vmax.f32 %v604_v38, 0.0 }
 0x11c   :  { %v497_v48 = vadd.f32 %v1465_v42, %v1698_v40  ;;  %v625_v49 = vadd.f32 %v1497_v43, %v1698_v40  ;;  %v488_v50 = vpop.f32.mrf.mxu0  ;;  %v616_v51 = vpop.f32.mrf.mxu1 }
 0x11d   :  { %1360 = vst [vmem:[%s1863_s3 + $0x68] sm:$0xff] %v1256_v44   ;;  %1376 = vst [vmem:[%s1863_s3 + $0xe8] sm:$0xff] %v1336_v45   ;;  %v1251_v52 = vpack.c.bf16 %v656_v46, %v655_v39  ;;  %v1331_v53 = vpack.c.bf16 %v688_v47, %v687_v41  ;;  %v489_v54 = vadd.f32 %v1698_v40, %v488_v50 }
 0x11e   :  { %v617_v55 = vadd.f32 %v1698_v40, %v616_v51  ;;  %v1466_v56 = vpop.f32.mrf.mxu0  ;;  %v1498_v57 = vpop.f32.mrf.mxu1  ;;  %v661_v60 = vmax.f32 %v497_v48, 0.0  ;;  %v693_v61 = vmax.f32 %v625_v49, 0.0 }
 0x11f   :  { %1359 = vst [vmem:[%s1863_s3 + $0x60] sm:$0xff] %v1251_v52   ;;  %1375 = vst [vmem:[%s1863_s3 + $0xe0] sm:$0xff] %v1331_v53   ;;  %v500_v58 = vadd.f32 %v1466_v56, %v1698_v40  ;;  %v628_v59 = vadd.f32 %v1498_v57, %v1698_v40  ;;  %v659_v4 = vmax.f32 %v489_v54, 0.0 }
 0x120   :  { %v491_v62 = vpop.f32.mrf.mxu0  ;;  %v619_v63 = vpop.f32.mrf.mxu1  ;;  %v691_v5 = vmax.f32 %v617_v55, 0.0 }
 0x121   :  { %v662_v0 = vmax.f32 %v500_v58, 0.0  ;;  %v694_v1 = vmax.f32 %v628_v59, 0.0  ;;  %v492_v2 = vadd.f32 %v1698_v40, %v491_v62  ;;  %v620_v3 = vadd.f32 %v1698_v40, %v619_v63 }
 0x123   :  { %v1266_v6 = vpack.c.bf16 %v662_v0, %v661_v60  ;;  %v1346_v7 = vpack.c.bf16 %v694_v1, %v693_v61  ;;  %v660_v8 = vmax.f32 %v492_v2, 0.0  ;;  %v692_v9 = vmax.f32 %v620_v3, 0.0 }
 0x125   :  { %1362 = vst [vmem:[%s1863_s3 + $0x78] sm:$0xff] %v1266_v6   ;;  %1378 = vst [vmem:[%s1863_s3 + $0xf8] sm:$0xff] %v1346_v7   ;;  %v1261_v10 = vpack.c.bf16 %v660_v8, %v659_v4  ;;  %v1341_v11 = vpack.c.bf16 %v692_v9, %v691_v5 }
 0x127   :  { %1361 = vst [vmem:[%s1863_s3 + $0x70] sm:$0xff] %v1261_v10   ;;  %1377 = vst [vmem:[%s1863_s3 + $0xf0] sm:$0xff] %v1341_v11  }

// kernel: resnet_basic_block.3
= control target key start
LH: loop header
LB: loop body
LE: loop exit
PB: predicated region body
PF: predicated region fallthrough
CT: control target
= control target key end

     0   :  { %s1948_s1 = inlined_call_operand.vmem [shape: bf16[128,128], index: 1, kind: input, shape index: {}]   ;;  %s1949_s0 = inlined_call_operand.vmem [shape: bf16[512,128], index: 0, kind: input, shape index: {}]   ;;  %s1950_s3 = inlined_call_operand.vmem [shape: bf16[512,128], index: 3, kind: input, shape index: {}]   ;;  %s1951_s2 = inlined_call_operand.vmem [shape: f32[1,128], index: 2, kind: input, shape index: {}]   ;;  %s1952_s4 = inlined_call_operand.vmem [shape: f32[512,128], index: 4, kind: output, shape index: {}]  }
   0x1   :  { %v1294_v0 = vld [vmem:[%s1948_s1 + $0x38] sm:$0xff]   ;;  %v1295_v1 = vld [vmem:[%s1948_s1 + $0x30] sm:$0xff]   ;;  %v1296_v2 = vld [vmem:[%s1948_s1 + $0x28] sm:$0xff]  }
   0x2   :  { %1198 = vmatprep.subr.bf16.mxu0 %v1294_v0  ;;  %1278 = vmatprep.subr.bf16.mxu1 %v1294_v0  ;;  %v1297_v3 = vld [vmem:[%s1948_s1 + $0x20] sm:$0xff]   ;;  %v1298_v6 = vld [vmem:[%s1948_s1 + $0x18] sm:$0xff]   ;;  %v1299_v7 = vld [vmem:[%s1948_s1 + $0x10] sm:$0xff]  }
   0x3   :  { %1199 = vmatpush3.bf16.msra.mxu0 %v1294_v0  ;;  %1286 = vmatpush3.bf16.msra.mxu1 %v1294_v0  ;;  %v1302_v4 = vld [vmem:[%s1949_s0] sm:$0xff]   ;;  %v1300_v8 = vld [vmem:[%s1948_s1 + $0x8] sm:$0xff]   ;;  %v1306_v12 = vld [vmem:[%s1949_s0 + $0x10] sm:$0xff]  }
   0x4   :  { %1200 = vmatprep.subr.bf16.mxu0 %v1295_v1  ;;  %1279 = vmatprep.subr.bf16.mxu1 %v1295_v1  ;;  %v1303_v5 = vld [vmem:[%s1949_s0 + $0x80] sm:$0xff]   ;;  %v1304_v10 = vld [vmem:[%s1949_s0 + $0x8] sm:$0xff]   ;;  %v1307_v13 = vld [vmem:[%s1949_s0 + $0x90] sm:$0xff]  }
   0x5   :  { %1214 = vmatprep.mubr.bf16.mxu0 %v1302_v4  ;;  %1246 = vmatprep.mubr.bf16.mxu1 %v1303_v5  ;;  %v1301_v9 = vld [vmem:[%s1948_s1] sm:$0xff]   ;;  %v1305_v11 = vld [vmem:[%s1949_s0 + $0x88] sm:$0xff]   ;;  %v1308_v14 = vld [vmem:[%s1949_s0 + $0x18] sm:$0xff]  }
   0x6   :  { %v1309_v15 = vld [vmem:[%s1949_s0 + $0x98] sm:$0xff]   ;;  %v1310_v16 = vld [vmem:[%s1949_s0 + $0x20] sm:$0xff]   ;;  %v1312_v18 = vld [vmem:[%s1949_s0 + $0x28] sm:$0xff]  }
   0x7   :  { %1201 = vmatpush3.bf16.msra.mxu0 %v1295_v1  ;;  %1287 = vmatpush3.bf16.msra.mxu1 %v1295_v1  ;;  %v1311_v17 = vld [vmem:[%s1949_s0 + $0xa0] sm:$0xff]   ;;  %v1313_v19 = vld [vmem:[%s1949_s0 + $0xa8] sm:$0xff]   ;;  %v1314_v20 = vld [vmem:[%s1949_s0 + $0x30] sm:$0xff]  }
   0x8   :  { %1202 = vmatprep.subr.bf16.mxu0 %v1296_v2  ;;  %1280 = vmatprep.subr.bf16.mxu1 %v1296_v2  ;;  %v1315_v21 = vld [vmem:[%s1949_s0 + $0xb0] sm:$0xff]   ;;  %v1316_v22 = vld [vmem:[%s1949_s0 + $0x38] sm:$0xff]   ;;  %v1318_v24 = vld [vmem:[%s1949_s0 + $0x40] sm:$0xff]  }
   0x9   :  { %v1317_v23 = vld [vmem:[%s1949_s0 + $0xb8] sm:$0xff]   ;;  %v1319_v25 = vld [vmem:[%s1949_s0 + $0xc0] sm:$0xff]   ;;  %v1320_v26 = vld [vmem:[%s1949_s0 + $0x48] sm:$0xff]  }
   0xa   :  { %v1321_v27 = vld [vmem:[%s1949_s0 + $0xc8] sm:$0xff]   ;;  %v1322_v28 = vld [vmem:[%s1949_s0 + $0x50] sm:$0xff]   ;;  %v1324_v30 = vld [vmem:[%s1949_s0 + $0x58] sm:$0xff]  }
   0xb   :  { %1203 = vmatpush3.bf16.msra.mxu0 %v1296_v2  ;;  %1288 = vmatpush3.bf16.msra.mxu1 %v1296_v2  ;;  %v1323_v29 = vld [vmem:[%s1949_s0 + $0xd0] sm:$0xff]   ;;  %v1325_v31 = vld [vmem:[%s1949_s0 + $0xd8] sm:$0xff]   ;;  %v1326_v32 = vld [vmem:[%s1949_s0 + $0x60] sm:$0xff]  }
   0xc   :  { %1204 = vmatprep.subr.bf16.mxu0 %v1297_v3  ;;  %1281 = vmatprep.subr.bf16.mxu1 %v1297_v3  ;;  %v1327_v33 = vld [vmem:[%s1949_s0 + $0xe0] sm:$0xff]   ;;  %v1328_v34 = vld [vmem:[%s1949_s0 + $0x68] sm:$0xff]   ;;  %v1330_v36 = vld [vmem:[%s1949_s0 + $0x70] sm:$0xff]  }
   0xd   :  { %v1329_v35 = vld [vmem:[%s1949_s0 + $0xe8] sm:$0xff]   ;;  %v1331_v37 = vld [vmem:[%s1949_s0 + $0xf0] sm:$0xff]   ;;  %v1332_v38 = vld [vmem:[%s1949_s0 + $0x78] sm:$0xff]  }
   0xe   :  { %v1333_v39 = vld [vmem:[%s1949_s0 + $0xf8] sm:$0xff]   ;;  %v1127_v40 = vld [vmem:[%s1950_s3 + $0x8] sm:$0xff]   ;;  %v1488_v42 = vld [vmem:[%s1951_s2] ss:$0 sm:$0xff] }
   0xf   :  { %1205 = vmatpush3.bf16.msra.mxu0 %v1297_v3  ;;  %1289 = vmatpush3.bf16.msra.mxu1 %v1297_v3  ;;  %v1143_v41 = vld [vmem:[%s1950_s3 + $0x88] sm:$0xff]   ;;  %v1000_v43 = vld [vmem:[%s1950_s3] sm:$0xff]   ;;  %v1005_v45 = vunpack.c.l.bf16 %v1127_v40  ;;  %v1503_v59 = vld [vmem:[%s1950_s3 + $0x18] sm:$0xff]   ;;  %v1006_v62 = vunpack.c.h.bf16 %v1127_v40 }
  0x10   :  { %1206 = vmatprep.subr.bf16.mxu0 %v1298_v6  ;;  %1282 = vmatprep.subr.bf16.mxu1 %v1298_v6  ;;  %v1142_v44 = vld [vmem:[%s1950_s3 + $0x80] sm:$0xff]   ;;  %v1069_v46 = vunpack.c.l.bf16 %v1143_v41  ;;  %v1001_v51 = vunpack.c.l.bf16 %v1000_v43  ;;  %v1508_v60 = vld [vmem:[%s1950_s3 + $0x98] sm:$0xff]   ;;  %v1070_v0 = vunpack.c.h.bf16 %v1143_v41  ;;  %v1002_v1 = vunpack.c.h.bf16 %v1000_v43  ;;  %v1552_v40 = vld [vmem:[%s1950_s3 + $0xa8] sm:$0xff]  }
  0x11   :  { %v1065_v52 = vunpack.c.l.bf16 %v1142_v44  ;;  %v1066_v2 = vunpack.c.h.bf16 %v1142_v44 }
  0x13   :  { %1207 = vmatpush3.bf16.msra.mxu0 %v1298_v6  ;;  %1290 = vmatpush3.bf16.msra.mxu1 %v1298_v6 }
  0x14   :  { %1208 = vmatprep.subr.bf16.mxu0 %v1299_v7  ;;  %1283 = vmatprep.subr.bf16.mxu1 %v1299_v7 }
  0x17   :  { %1209 = vmatpush3.bf16.msra.mxu0 %v1299_v7  ;;  %1291 = vmatpush3.bf16.msra.mxu1 %v1299_v7  ;;  %v1513_v7 = vld [vmem:[%s1950_s3 + $0x10] sm:$0xff]  }
  0x18   :  { %1210 = vmatprep.subr.bf16.mxu0 %v1300_v8  ;;  %1284 = vmatprep.subr.bf16.mxu1 %v1300_v8 }
  0x1b   :  { %1211 = vmatpush3.bf16.msra.mxu0 %v1300_v8  ;;  %1292 = vmatpush3.bf16.msra.mxu1 %v1300_v8  ;;  %v1518_v8 = vld [vmem:[%s1950_s3 + $0x90] sm:$0xff]  }
  0x1c   :  { %1212 = vmatprep.subr.bf16.mxu0 %v1301_v9  ;;  %1285 = vmatprep.subr.bf16.mxu1 %v1301_v9 }
  0x1f   :  { %1213 = vmatpush3.bf16.msra.mxu0 %v1301_v9  ;;  %1293 = vmatpush3.bf16.msra.mxu1 %v1301_v9 }
  0x22   :  { %1215 = vmatmul.mubr.bf16.vlgmr.msra.gmra.mxu0 %v1304_v10  ;;  %1247 = vmatmul.mubr.bf16.vlgmr.msra.gmra.mxu1 %v1305_v11 }
  0x23   :  { %1218 = vmatprep.mubr.bf16.mxu0 %v1306_v12  ;;  %1250 = vmatprep.mubr.bf16.mxu1 %v1307_v13  ;;  %v1013_v13 = vunpack.c.l.bf16 %v1503_v59 }
  0x2a   :  { %1219 = vmatmul.mubr.bf16.gmra.mxu0 %v1308_v14  ;;  %1251 = vmatmul.mubr.bf16.gmra.mxu1 %v1309_v15  ;;  %v1077_v14 = vunpack.c.l.bf16 %v1508_v60 }
  0x2b   :  { %1222 = vmatprep.mubr.bf16.mxu0 %v1310_v16  ;;  %1254 = vmatprep.mubr.bf16.mxu1 %v1311_v17 }
  0x32   :  { %1223 = vmatmul.mubr.bf16.gmra.mxu0 %v1312_v18  ;;  %1255 = vmatmul.mubr.bf16.gmra.mxu1 %v1313_v19 }
  0x33   :  { %1226 = vmatprep.mubr.bf16.mxu0 %v1314_v20  ;;  %1258 = vmatprep.mubr.bf16.mxu1 %v1315_v21 }
  0x3a   :  { %1227 = vmatmul.mubr.bf16.gmra.mxu0 %v1316_v22  ;;  %1259 = vmatmul.mubr.bf16.gmra.mxu1 %v1317_v23  ;;  %v1009_v23 = vunpack.c.l.bf16 %v1513_v7 }
  0x3b   :  { %1230 = vmatprep.mubr.bf16.mxu0 %v1318_v24  ;;  %1262 = vmatprep.mubr.bf16.mxu1 %v1319_v25  ;;  %v1073_v24 = vunpack.c.l.bf16 %v1518_v8 }
  0x42   :  { %1231 = vmatmul.mubr.bf16.gmra.mxu0 %v1320_v26  ;;  %1263 = vmatmul.mubr.bf16.gmra.mxu1 %v1321_v27 }
  0x43   :  { %1234 = vmatprep.mubr.bf16.mxu0 %v1322_v28  ;;  %1266 = vmatprep.mubr.bf16.mxu1 %v1323_v29 }
  0x4a   :  { %1235 = vmatmul.mubr.bf16.gmra.mxu0 %v1324_v30  ;;  %1267 = vmatmul.mubr.bf16.gmra.mxu1 %v1325_v31 }
  0x4b   :  { %1238 = vmatprep.mubr.bf16.mxu0 %v1326_v32  ;;  %1270 = vmatprep.mubr.bf16.mxu1 %v1327_v33  ;;  %v1014_v33 = vunpack.c.h.bf16 %v1503_v59  ;;  %v1085_v59 = vunpack.c.l.bf16 %v1552_v40 }
  0x52   :  { %1239 = vmatmul.mubr.bf16.gmra.mxu0 %v1328_v34  ;;  %1271 = vmatmul.mubr.bf16.gmra.mxu1 %v1329_v35  ;;  %v1078_v34 = vunpack.c.h.bf16 %v1508_v60 }
  0x53   :  { %1242 = vmatprep.mubr.bf16.mxu0 %v1330_v36  ;;  %1274 = vmatprep.mubr.bf16.mxu1 %v1331_v37 }
  0x5a   :  { %1243 = vmatmul.mubr.bf16.gmra.mxu0 %v1332_v38  ;;  %1275 = vmatmul.mubr.bf16.gmra.mxu1 %v1333_v39  ;;  %v1547_v39 = vld [vmem:[%s1950_s3 + $0x28] sm:$0xff]  }
  0xe2   :  { %v1216_v47 = vpop.f32.mrf.mxu0  ;;  %v1248_v48 = vpop.f32.mrf.mxu1 }
  0xe3   :  { %v388_v49 = vadd.f32 %v1216_v47, %v1488_v42  ;;  %v516_v50 = vadd.f32 %v1248_v48, %v1488_v42  ;;  %v1074_v47 = vunpack.c.h.bf16 %v1518_v8 }
  0xe4   :  { %v379_v53 = vpop.f32.mrf.mxu0  ;;  %v507_v54 = vpop.f32.mrf.mxu1 }
  0xe5   :  { %v764_v55 = vadd.f32 %v1005_v45, %v388_v49  ;;  %v796_v56 = vadd.f32 %v1069_v46, %v516_v50  ;;  %v380_v57 = vadd.f32 %v1488_v42, %v379_v53  ;;  %v508_v58 = vadd.f32 %v1488_v42, %v507_v54  ;;  %v1580_v53 = vld [vmem:[%s1950_s3 + $0xa0] sm:$0xff]  }
  0xe6   :  { %v1217_v61 = vpop.f32.mrf.mxu0  ;;  %v1249_v63 = vpop.f32.mrf.mxu1  ;;  %v1010_v46 = vunpack.c.h.bf16 %v1513_v7 }
  0xe7   :  { %v828_v3 = vmax.f32 %v764_v55, 0.0  ;;  %v860_v4 = vmax.f32 %v796_v56, 0.0  ;;  %v762_v5 = vadd.f32 %v1001_v51, %v380_v57  ;;  %v794_v6 = vadd.f32 %v1065_v52, %v508_v58  ;;  %v1575_v52 = vld [vmem:[%s1950_s3 + $0x20] sm:$0xff]  }
  0xe8   :  { %v391_v9 = vadd.f32 %v1217_v61, %v1488_v42  ;;  %v519_v10 = vadd.f32 %v1249_v63, %v1488_v42  ;;  %v382_v11 = vpop.f32.mrf.mxu0  ;;  %v510_v12 = vpop.f32.mrf.mxu1  ;;  %v1021_v58 = vunpack.c.l.bf16 %v1547_v39 }
  0xe9   :  { %892 = vst [vmem:[%s1952_s4 + $0x10] sm:$0xff] %v828_v3  ;;  %924 = vst [vmem:[%s1952_s4 + $0x110] sm:$0xff] %v860_v4  ;;  %v826_v15 = vmax.f32 %v762_v5, 0.0  ;;  %v858_v16 = vmax.f32 %v794_v6, 0.0  ;;  %v383_v17 = vadd.f32 %v1488_v42, %v382_v11  ;;  %v511_v18 = vadd.f32 %v1488_v42, %v510_v12 }
  0xea   :  { %v765_v19 = vadd.f32 %v1006_v62, %v391_v9  ;;  %v797_v20 = vadd.f32 %v1070_v0, %v519_v10  ;;  %v1220_v21 = vpop.f32.mrf.mxu0  ;;  %v1252_v22 = vpop.f32.mrf.mxu1  ;;  %v1017_v4 = vunpack.c.l.bf16 %v1575_v52  ;;  %v1081_v5 = vunpack.c.l.bf16 %v1580_v53 }
  0xeb   :  { %890 = vst [vmem:[%s1952_s4] sm:$0xff] %v826_v15  ;;  %922 = vst [vmem:[%s1952_s4 + $0x100] sm:$0xff] %v858_v16  ;;  %v763_v25 = vadd.f32 %v1002_v1, %v383_v17  ;;  %v795_v26 = vadd.f32 %v1066_v2, %v511_v18  ;;  %v404_v27 = vadd.f32 %v1220_v21, %v1488_v42  ;;  %v1086_v15 = vunpack.c.h.bf16 %v1552_v40  ;;  %v1620_v21 = vld [vmem:[%s1950_s3 + $0xb8] sm:$0xff]  }
  0xec   :  { %v532_v28 = vadd.f32 %v1252_v22, %v1488_v42  ;;  %v829_v29 = vmax.f32 %v765_v19, 0.0  ;;  %v861_v30 = vmax.f32 %v797_v20, 0.0  ;;  %v395_v31 = vpop.f32.mrf.mxu0  ;;  %v523_v32 = vpop.f32.mrf.mxu1  ;;  %v1615_v20 = vld [vmem:[%s1950_s3 + $0x38] sm:$0xff]  }
  0xed   :  { %v827_v35 = vmax.f32 %v763_v25, 0.0  ;;  %v859_v36 = vmax.f32 %v795_v26, 0.0  ;;  %v768_v37 = vadd.f32 %v1013_v13, %v404_v27  ;;  %v396_v41 = vadd.f32 %v1488_v42, %v395_v31 }
  0xee   :  { %v800_v38 = vadd.f32 %v1077_v14, %v532_v28  ;;  %893 = vst [vmem:[%s1952_s4 + $0x18] sm:$0xff] %v829_v29  ;;  %925 = vst [vmem:[%s1952_s4 + $0x118] sm:$0xff] %v861_v30  ;;  %v524_v43 = vadd.f32 %v1488_v42, %v523_v32  ;;  %v1221_v44 = vpop.f32.mrf.mxu0  ;;  %v1253_v45 = vpop.f32.mrf.mxu1  ;;  %v1022_v14 = vunpack.c.h.bf16 %v1547_v39  ;;  %v1018_v26 = vunpack.c.h.bf16 %v1575_v52  ;;  %v1635_v32 = vld [vmem:[%s1950_s3 + $0x30] sm:$0xff]  }
  0xef   :  { %891 = vst [vmem:[%s1952_s4 + $0x8] sm:$0xff] %v827_v35  ;;  %923 = vst [vmem:[%s1952_s4 + $0x108] sm:$0xff] %v859_v36  ;;  %v832_v48 = vmax.f32 %v768_v37, 0.0  ;;  %v407_v50 = vadd.f32 %v1221_v44, %v1488_v42  ;;  %v535_v51 = vadd.f32 %v1253_v45, %v1488_v42  ;;  %v766_v54 = vadd.f32 %v1009_v23, %v396_v41 }
  0xf0   :  { %v864_v49 = vmax.f32 %v800_v38, 0.0  ;;  %v798_v55 = vadd.f32 %v1073_v24, %v524_v43  ;;  %v398_v56 = vpop.f32.mrf.mxu0  ;;  %v526_v57 = vpop.f32.mrf.mxu1  ;;  %v1082_v27 = vunpack.c.h.bf16 %v1580_v53  ;;  %v1029_v38 = vunpack.c.l.bf16 %v1615_v20 }
  0xf1   :  { %896 = vst [vmem:[%s1952_s4 + $0x30] sm:$0xff] %v832_v48  ;;  %v769_v60 = vadd.f32 %v1014_v33, %v407_v50  ;;  %v801_v61 = vadd.f32 %v1078_v34, %v535_v51  ;;  %v399_v62 = vadd.f32 %v1488_v42, %v398_v56  ;;  %v527_v63 = vadd.f32 %v1488_v42, %v526_v57  ;;  %v1640_v33 = vld [vmem:[%s1950_s3 + $0xb0] sm:$0xff]  }
  0xf2   :  { %928 = vst [vmem:[%s1952_s4 + $0x130] sm:$0xff] %v864_v49  ;;  %v830_v0 = vmax.f32 %v766_v54, 0.0  ;;  %v862_v1 = vmax.f32 %v798_v55, 0.0  ;;  %v1224_v2 = vpop.f32.mrf.mxu0  ;;  %v1256_v3 = vpop.f32.mrf.mxu1  ;;  %v1093_v39 = vunpack.c.l.bf16 %v1620_v21  ;;  %v1025_v49 = vunpack.c.l.bf16 %v1635_v32 }
  0xf3   :  { %v833_v6 = vmax.f32 %v769_v60, 0.0  ;;  %v865_v7 = vmax.f32 %v801_v61, 0.0  ;;  %v767_v8 = vadd.f32 %v1010_v46, %v399_v62  ;;  %v799_v9 = vadd.f32 %v1074_v47, %v527_v63 }
  0xf4   :  { %894 = vst [vmem:[%s1952_s4 + $0x20] sm:$0xff] %v830_v0  ;;  %926 = vst [vmem:[%s1952_s4 + $0x120] sm:$0xff] %v862_v1  ;;  %v420_v10 = vadd.f32 %v1224_v2, %v1488_v42  ;;  %v548_v11 = vadd.f32 %v1256_v3, %v1488_v42  ;;  %v411_v12 = vpop.f32.mrf.mxu0  ;;  %v539_v13 = vpop.f32.mrf.mxu1  ;;  %v1089_v50 = vunpack.c.l.bf16 %v1640_v33  ;;  %v1094_v60 = vunpack.c.h.bf16 %v1620_v21  ;;  %v1675_v1 = vld [vmem:[%s1950_s3 + $0x48] sm:$0xff]  }
  0xf5   :  { %897 = vst [vmem:[%s1952_s4 + $0x38] sm:$0xff] %v833_v6  ;;  %929 = vst [vmem:[%s1952_s4 + $0x138] sm:$0xff] %v865_v7  ;;  %v831_v16 = vmax.f32 %v767_v8, 0.0  ;;  %v863_v17 = vmax.f32 %v799_v9, 0.0  ;;  %v412_v18 = vadd.f32 %v1488_v42, %v411_v12  ;;  %v540_v19 = vadd.f32 %v1488_v42, %v539_v13  ;;  %v1680_v2 = vld [vmem:[%s1950_s3 + $0xc8] sm:$0xff]   ;;  %v1687_v13 = vld [vmem:[%s1950_s3 + $0x40] sm:$0xff]  }
  0xf6   :  { %v772_v22 = vadd.f32 %v1021_v58, %v420_v10  ;;  %v804_v23 = vadd.f32 %v1085_v59, %v548_v11  ;;  %v1225_v24 = vpop.f32.mrf.mxu0  ;;  %v1257_v25 = vpop.f32.mrf.mxu1  ;;  %v1030_v59 = vunpack.c.h.bf16 %v1615_v20  ;;  %v1026_v7 = vunpack.c.h.bf16 %v1635_v32 }
  0xf7   :  { %895 = vst [vmem:[%s1952_s4 + $0x28] sm:$0xff] %v831_v16  ;;  %927 = vst [vmem:[%s1952_s4 + $0x128] sm:$0xff] %v863_v17  ;;  %v770_v28 = vadd.f32 %v1017_v4, %v412_v18  ;;  %v802_v29 = vadd.f32 %v1081_v5, %v540_v19  ;;  %v423_v30 = vadd.f32 %v1225_v24, %v1488_v42  ;;  %v1090_v8 = vunpack.c.h.bf16 %v1640_v33 }
  0xf8   :  { %v551_v31 = vadd.f32 %v1257_v25, %v1488_v42  ;;  %v836_v34 = vmax.f32 %v772_v22, 0.0  ;;  %v868_v35 = vmax.f32 %v804_v23, 0.0  ;;  %v414_v36 = vpop.f32.mrf.mxu0  ;;  %v542_v37 = vpop.f32.mrf.mxu1  ;;  %v1037_v19 = vunpack.c.l.bf16 %v1675_v1 }
  0xf9   :  { %v834_v40 = vmax.f32 %v770_v28, 0.0  ;;  %v866_v41 = vmax.f32 %v802_v29, 0.0  ;;  %v773_v43 = vadd.f32 %v1022_v14, %v423_v30  ;;  %v415_v45 = vadd.f32 %v1488_v42, %v414_v36  ;;  %v1692_v14 = vld [vmem:[%s1950_s3 + $0xc0] sm:$0xff]  }
  0xfa   :  { %v805_v44 = vadd.f32 %v1086_v15, %v551_v31  ;;  %900 = vst [vmem:[%s1952_s4 + $0x50] sm:$0xff] %v836_v34  ;;  %932 = vst [vmem:[%s1952_s4 + $0x150] sm:$0xff] %v868_v35  ;;  %v543_v46 = vadd.f32 %v1488_v42, %v542_v37  ;;  %v1228_v47 = vpop.f32.mrf.mxu0  ;;  %v1260_v48 = vpop.f32.mrf.mxu1  ;;  %v1101_v20 = vunpack.c.l.bf16 %v1680_v2  ;;  %v1033_v29 = vunpack.c.l.bf16 %v1687_v13 }
  0xfb   :  { %898 = vst [vmem:[%s1952_s4 + $0x40] sm:$0xff] %v834_v40  ;;  %930 = vst [vmem:[%s1952_s4 + $0x140] sm:$0xff] %v866_v41  ;;  %v837_v51 = vmax.f32 %v773_v43, 0.0  ;;  %v436_v53 = vadd.f32 %v1228_v47, %v1488_v42  ;;  %v564_v54 = vadd.f32 %v1260_v48, %v1488_v42  ;;  %v771_v55 = vadd.f32 %v1018_v26, %v415_v45  ;;  %v1732_v47 = vld [vmem:[%s1950_s3 + $0xd8] sm:$0xff]  }
  0xfc   :  { %v869_v52 = vmax.f32 %v805_v44, 0.0  ;;  %v803_v56 = vadd.f32 %v1082_v27, %v543_v46  ;;  %v427_v57 = vpop.f32.mrf.mxu0  ;;  %v555_v58 = vpop.f32.mrf.mxu1  ;;  %v1097_v30 = vunpack.c.l.bf16 %v1692_v14  ;;  %v1102_v40 = vunpack.c.h.bf16 %v1680_v2  ;;  %v1727_v46 = vld [vmem:[%s1950_s3 + $0x58] sm:$0xff]  }
  0xfd   :  { %901 = vst [vmem:[%s1952_s4 + $0x58] sm:$0xff] %v837_v51  ;;  %v776_v61 = vadd.f32 %v1029_v38, %v436_v53  ;;  %v808_v62 = vadd.f32 %v1093_v39, %v564_v54  ;;  %v428_v63 = vadd.f32 %v1488_v42, %v427_v57  ;;  %v556_v0 = vadd.f32 %v1488_v42, %v555_v58  ;;  %v1755_v58 = vld [vmem:[%s1950_s3 + $0x50] sm:$0xff]  }
  0xfe   :  { %933 = vst [vmem:[%s1952_s4 + $0x158] sm:$0xff] %v869_v52  ;;  %v835_v3 = vmax.f32 %v771_v55, 0.0  ;;  %v867_v4 = vmax.f32 %v803_v56, 0.0  ;;  %v1229_v5 = vpop.f32.mrf.mxu0  ;;  %v1261_v6 = vpop.f32.mrf.mxu1  ;;  %v1038_v39 = vunpack.c.h.bf16 %v1675_v1  ;;  %v1034_v52 = vunpack.c.h.bf16 %v1687_v13 }
  0xff   :  { %v840_v9 = vmax.f32 %v776_v61, 0.0  ;;  %v872_v10 = vmax.f32 %v808_v62, 0.0  ;;  %v774_v11 = vadd.f32 %v1025_v49, %v428_v63  ;;  %v806_v12 = vadd.f32 %v1089_v50, %v556_v0 }
 0x100   :  { %899 = vst [vmem:[%s1952_s4 + $0x48] sm:$0xff] %v835_v3  ;;  %931 = vst [vmem:[%s1952_s4 + $0x148] sm:$0xff] %v867_v4  ;;  %v439_v15 = vadd.f32 %v1229_v5, %v1488_v42  ;;  %v567_v16 = vadd.f32 %v1261_v6, %v1488_v42  ;;  %v430_v17 = vpop.f32.mrf.mxu0  ;;  %v558_v18 = vpop.f32.mrf.mxu1  ;;  %v1098_v53 = vunpack.c.h.bf16 %v1692_v14  ;;  %v1045_v0 = vunpack.c.l.bf16 %v1727_v46 }
 0x101   :  { %904 = vst [vmem:[%s1952_s4 + $0x70] sm:$0xff] %v840_v9  ;;  %936 = vst [vmem:[%s1952_s4 + $0x170] sm:$0xff] %v872_v10  ;;  %v838_v21 = vmax.f32 %v774_v11, 0.0  ;;  %v870_v22 = vmax.f32 %v806_v12, 0.0  ;;  %v431_v23 = vadd.f32 %v1488_v42, %v430_v17  ;;  %v559_v24 = vadd.f32 %v1488_v42, %v558_v18 }
 0x102   :  { %v777_v25 = vadd.f32 %v1030_v59, %v439_v15  ;;  %v809_v26 = vadd.f32 %v1094_v60, %v567_v16  ;;  %v1232_v27 = vpop.f32.mrf.mxu0  ;;  %v1264_v28 = vpop.f32.mrf.mxu1  ;;  %v1760_v59 = vld [vmem:[%s1950_s3 + $0xd0] sm:$0xff]   ;;  %v1109_v1 = vunpack.c.l.bf16 %v1732_v47  ;;  %v1041_v10 = vunpack.c.l.bf16 %v1755_v58 }
 0x103   :  { %902 = vst [vmem:[%s1952_s4 + $0x60] sm:$0xff] %v838_v21  ;;  %934 = vst [vmem:[%s1952_s4 + $0x160] sm:$0xff] %v870_v22  ;;  %v775_v31 = vadd.f32 %v1026_v7, %v431_v23  ;;  %v807_v32 = vadd.f32 %v1090_v8, %v559_v24  ;;  %v452_v33 = vadd.f32 %v1232_v27, %v1488_v42  ;;  %v1105_v11 = vunpack.c.l.bf16 %v1760_v59  ;;  %v1800_v27 = vld [vmem:[%s1950_s3 + $0xe8] sm:$0xff]  }
 0x104   :  { %v580_v34 = vadd.f32 %v1264_v28, %v1488_v42  ;;  %v841_v35 = vmax.f32 %v777_v25, 0.0  ;;  %v873_v36 = vmax.f32 %v809_v26, 0.0  ;;  %v443_v37 = vpop.f32.mrf.mxu0  ;;  %v571_v38 = vpop.f32.mrf.mxu1  ;;  %v1110_v21 = vunpack.c.h.bf16 %v1732_v47  ;;  %v1795_v26 = vld [vmem:[%s1950_s3 + $0x68] sm:$0xff]  }
 0x105   :  { %v839_v41 = vmax.f32 %v775_v31, 0.0  ;;  %v871_v43 = vmax.f32 %v807_v32, 0.0  ;;  %v780_v44 = vadd.f32 %v1037_v19, %v452_v33  ;;  %v444_v48 = vadd.f32 %v1488_v42, %v443_v37 }
 0x106   :  { %v812_v45 = vadd.f32 %v1101_v20, %v580_v34  ;;  %905 = vst [vmem:[%s1952_s4 + $0x78] sm:$0xff] %v841_v35  ;;  %937 = vst [vmem:[%s1952_s4 + $0x178] sm:$0xff] %v873_v36  ;;  %v572_v49 = vadd.f32 %v1488_v42, %v571_v38  ;;  %v1233_v50 = vpop.f32.mrf.mxu0  ;;  %v1265_v51 = vpop.f32.mrf.mxu1  ;;  %v1046_v20 = vunpack.c.h.bf16 %v1727_v46  ;;  %v1042_v32 = vunpack.c.h.bf16 %v1755_v58  ;;  %v1815_v38 = vld [vmem:[%s1950_s3 + $0x60] sm:$0xff]  }
 0x107   :  { %903 = vst [vmem:[%s1952_s4 + $0x68] sm:$0xff] %v839_v41  ;;  %935 = vst [vmem:[%s1952_s4 + $0x168] sm:$0xff] %v871_v43  ;;  %v844_v54 = vmax.f32 %v780_v44, 0.0  ;;  %v455_v56 = vadd.f32 %v1233_v50, %v1488_v42  ;;  %v583_v57 = vadd.f32 %v1265_v51, %v1488_v42  ;;  %v778_v60 = vadd.f32 %v1033_v29, %v444_v48 }
 0x108   :  { %v876_v55 = vmax.f32 %v812_v45, 0.0  ;;  %v810_v61 = vadd.f32 %v1097_v30, %v572_v49  ;;  %v446_v62 = vpop.f32.mrf.mxu0  ;;  %v574_v63 = vpop.f32.mrf.mxu1  ;;  %v1106_v33 = vunpack.c.h.bf16 %v1760_v59  ;;  %v1053_v45 = vunpack.c.l.bf16 %v1795_v26 }
 0x109   :  { %908 = vst [vmem:[%s1952_s4 + $0x90] sm:$0xff] %v844_v54  ;;  %v781_v2 = vadd.f32 %v1038_v39, %v455_v56  ;;  %v813_v3 = vadd.f32 %v1102_v40, %v583_v57  ;;  %v447_v4 = vadd.f32 %v1488_v42, %v446_v62  ;;  %v575_v5 = vadd.f32 %v1488_v42, %v574_v63  ;;  %v1820_v39 = vld [vmem:[%s1950_s3 + $0xe0] sm:$0xff]  }
 0x10a   :  { %940 = vst [vmem:[%s1952_s4 + $0x190] sm:$0xff] %v876_v55  ;;  %v842_v6 = vmax.f32 %v778_v60, 0.0  ;;  %v874_v7 = vmax.f32 %v810_v61, 0.0  ;;  %v1236_v8 = vpop.f32.mrf.mxu0  ;;  %v1268_v9 = vpop.f32.mrf.mxu1  ;;  %v1117_v46 = vunpack.c.l.bf16 %v1800_v27  ;;  %v1049_v55 = vunpack.c.l.bf16 %v1815_v38 }
 0x10b   :  { %v845_v12 = vmax.f32 %v781_v2, 0.0  ;;  %v877_v13 = vmax.f32 %v813_v3, 0.0  ;;  %v779_v14 = vadd.f32 %v1034_v52, %v447_v4  ;;  %v811_v15 = vadd.f32 %v1098_v53, %v575_v5 }
 0x10c   :  { %906 = vst [vmem:[%s1952_s4 + $0x80] sm:$0xff] %v842_v6  ;;  %938 = vst [vmem:[%s1952_s4 + $0x180] sm:$0xff] %v874_v7  ;;  %v468_v16 = vadd.f32 %v1236_v8, %v1488_v42  ;;  %v596_v17 = vadd.f32 %v1268_v9, %v1488_v42  ;;  %v459_v18 = vpop.f32.mrf.mxu0  ;;  %v587_v19 = vpop.f32.mrf.mxu1  ;;  %v1113_v56 = vunpack.c.l.bf16 %v1820_v39  ;;  %v1118_v2 = vunpack.c.h.bf16 %v1800_v27  ;;  %v1855_v7 = vld [vmem:[%s1950_s3 + $0x78] sm:$0xff]  }
 0x10d   :  { %909 = vst [vmem:[%s1952_s4 + $0x98] sm:$0xff] %v845_v12  ;;  %941 = vst [vmem:[%s1952_s4 + $0x198] sm:$0xff] %v877_v13  ;;  %v843_v22 = vmax.f32 %v779_v14, 0.0  ;;  %v875_v23 = vmax.f32 %v811_v15, 0.0  ;;  %v460_v24 = vadd.f32 %v1488_v42, %v459_v18  ;;  %v588_v25 = vadd.f32 %v1488_v42, %v587_v19  ;;  %v1860_v8 = vld [vmem:[%s1950_s3 + $0xf8] sm:$0xff]   ;;  %v1867_v19 = vld [vmem:[%s1950_s3 + $0x70] sm:$0xff]  }
 0x10e   :  { %v784_v28 = vadd.f32 %v1045_v0, %v468_v16  ;;  %v816_v29 = vadd.f32 %v1109_v1, %v596_v17  ;;  %v1237_v30 = vpop.f32.mrf.mxu0  ;;  %v1269_v31 = vpop.f32.mrf.mxu1  ;;  %v1054_v1 = vunpack.c.h.bf16 %v1795_v26  ;;  %v1050_v13 = vunpack.c.h.bf16 %v1815_v38 }
 0x10f   :  { %907 = vst [vmem:[%s1952_s4 + $0x88] sm:$0xff] %v843_v22  ;;  %939 = vst [vmem:[%s1952_s4 + $0x188] sm:$0xff] %v875_v23  ;;  %v782_v34 = vadd.f32 %v1041_v10, %v460_v24  ;;  %v814_v35 = vadd.f32 %v1105_v11, %v588_v25  ;;  %v471_v36 = vadd.f32 %v1237_v30, %v1488_v42  ;;  %v1114_v14 = vunpack.c.h.bf16 %v1820_v39 }
 0x110   :  { %v599_v37 = vadd.f32 %v1269_v31, %v1488_v42  ;;  %v848_v40 = vmax.f32 %v784_v28, 0.0  ;;  %v880_v41 = vmax.f32 %v816_v29, 0.0  ;;  %v462_v43 = vpop.f32.mrf.mxu0  ;;  %v590_v44 = vpop.f32.mrf.mxu1  ;;  %v1061_v25 = vunpack.c.l.bf16 %v1855_v7 }
 0x111   :  { %v846_v47 = vmax.f32 %v782_v34, 0.0  ;;  %v878_v48 = vmax.f32 %v814_v35, 0.0  ;;  %v785_v49 = vadd.f32 %v1046_v20, %v471_v36  ;;  %v463_v51 = vadd.f32 %v1488_v42, %v462_v43  ;;  %v1872_v20 = vld [vmem:[%s1950_s3 + $0xf0] sm:$0xff]  }
 0x112   :  { %v817_v50 = vadd.f32 %v1110_v21, %v599_v37  ;;  %912 = vst [vmem:[%s1952_s4 + $0xb0] sm:$0xff] %v848_v40  ;;  %944 = vst [vmem:[%s1952_s4 + $0x1b0] sm:$0xff] %v880_v41  ;;  %v591_v52 = vadd.f32 %v1488_v42, %v590_v44  ;;  %v1240_v53 = vpop.f32.mrf.mxu0  ;;  %v1272_v54 = vpop.f32.mrf.mxu1  ;;  %v1125_v26 = vunpack.c.l.bf16 %v1860_v8  ;;  %v1057_v35 = vunpack.c.l.bf16 %v1867_v19 }
 0x113   :  { %910 = vst [vmem:[%s1952_s4 + $0xa0] sm:$0xff] %v846_v47  ;;  %942 = vst [vmem:[%s1952_s4 + $0x1a0] sm:$0xff] %v878_v48  ;;  %v849_v57 = vmax.f32 %v785_v49, 0.0  ;;  %v484_v59 = vadd.f32 %v1240_v53, %v1488_v42  ;;  %v612_v60 = vadd.f32 %v1272_v54, %v1488_v42  ;;  %v783_v61 = vadd.f32 %v1042_v32, %v463_v51 }
 0x114   :  { %v881_v58 = vmax.f32 %v817_v50, 0.0  ;;  %v815_v62 = vadd.f32 %v1106_v33, %v591_v52  ;;  %v475_v63 = vpop.f32.mrf.mxu0  ;;  %v603_v0 = vpop.f32.mrf.mxu1  ;;  %v1121_v36 = vunpack.c.l.bf16 %v1872_v20  ;;  %v1126_v47 = vunpack.c.h.bf16 %v1860_v8 }
 0x115   :  { %913 = vst [vmem:[%s1952_s4 + $0xb8] sm:$0xff] %v849_v57  ;;  %v788_v3 = vadd.f32 %v1053_v45, %v484_v59  ;;  %v820_v4 = vadd.f32 %v1117_v46, %v612_v60  ;;  %v476_v5 = vadd.f32 %v1488_v42, %v475_v63  ;;  %v604_v6 = vadd.f32 %v1488_v42, %v603_v0 }
 0x116   :  { %945 = vst [vmem:[%s1952_s4 + $0x1b8] sm:$0xff] %v881_v58  ;;  %v847_v9 = vmax.f32 %v783_v61, 0.0  ;;  %v879_v10 = vmax.f32 %v815_v62, 0.0  ;;  %v1241_v11 = vpop.f32.mrf.mxu0  ;;  %v1273_v12 = vpop.f32.mrf.mxu1  ;;  %v1062_v46 = vunpack.c.h.bf16 %v1855_v7  ;;  %v1122_v57 = vunpack.c.h.bf16 %v1872_v20 }
 0x117   :  { %v852_v15 = vmax.f32 %v788_v3, 0.0  ;;  %v884_v16 = vmax.f32 %v820_v4, 0.0  ;;  %v786_v17 = vadd.f32 %v1049_v55, %v476_v5  ;;  %v818_v18 = vadd.f32 %v1113_v56, %v604_v6 }
 0x118   :  { %911 = vst [vmem:[%s1952_s4 + $0xa8] sm:$0xff] %v847_v9  ;;  %943 = vst [vmem:[%s1952_s4 + $0x1a8] sm:$0xff] %v879_v10  ;;  %v487_v21 = vadd.f32 %v1241_v11, %v1488_v42  ;;  %v615_v22 = vadd.f32 %v1273_v12, %v1488_v42  ;;  %v478_v23 = vpop.f32.mrf.mxu0  ;;  %v606_v24 = vpop.f32.mrf.mxu1  ;;  %v1058_v56 = vunpack.c.h.bf16 %v1867_v19 }
 0x119   :  { %916 = vst [vmem:[%s1952_s4 + $0xd0] sm:$0xff] %v852_v15  ;;  %948 = vst [vmem:[%s1952_s4 + $0x1d0] sm:$0xff] %v884_v16  ;;  %v850_v27 = vmax.f32 %v786_v17, 0.0  ;;  %v882_v28 = vmax.f32 %v818_v18, 0.0  ;;  %v479_v29 = vadd.f32 %v1488_v42, %v478_v23  ;;  %v607_v30 = vadd.f32 %v1488_v42, %v606_v24 }
 0x11a   :  { %v789_v31 = vadd.f32 %v1054_v1, %v487_v21  ;;  %v821_v32 = vadd.f32 %v1118_v2, %v615_v22  ;;  %v1244_v33 = vpop.f32.mrf.mxu0  ;;  %v1276_v34 = vpop.f32.mrf.mxu1 }
 0x11b   :  { %914 = vst [vmem:[%s1952_s4 + $0xc0] sm:$0xff] %v850_v27  ;;  %946 = vst [vmem:[%s1952_s4 + $0x1c0] sm:$0xff] %v882_v28  ;;  %v787_v37 = vadd.f32 %v1050_v13, %v479_v29  ;;  %v819_v38 = vadd.f32 %v1114_v14, %v607_v30  ;;  %v500_v39 = vadd.f32 %v1244_v33, %v1488_v42 }
 0x11c   :  { %v628_v40 = vadd.f32 %v1276_v34, %v1488_v42  ;;  %v853_v41 = vmax.f32 %v789_v31, 0.0  ;;  %v885_v43 = vmax.f32 %v821_v32, 0.0  ;;  %v491_v44 = vpop.f32.mrf.mxu0  ;;  %v619_v45 = vpop.f32.mrf.mxu1 }
 0x11d   :  { %v851_v48 = vmax.f32 %v787_v37, 0.0  ;;  %v883_v49 = vmax.f32 %v819_v38, 0.0  ;;  %v792_v50 = vadd.f32 %v1061_v25, %v500_v39  ;;  %v492_v52 = vadd.f32 %v1488_v42, %v491_v44 }
 0x11e   :  { %v824_v51 = vadd.f32 %v1125_v26, %v628_v40  ;;  %917 = vst [vmem:[%s1952_s4 + $0xd8] sm:$0xff] %v853_v41  ;;  %949 = vst [vmem:[%s1952_s4 + $0x1d8] sm:$0xff] %v885_v43  ;;  %v620_v53 = vadd.f32 %v1488_v42, %v619_v45  ;;  %v1245_v54 = vpop.f32.mrf.mxu0  ;;  %v1277_v55 = vpop.f32.mrf.mxu1 }
 0x11f   :  { %915 = vst [vmem:[%s1952_s4 + $0xc8] sm:$0xff] %v851_v48  ;;  %947 = vst [vmem:[%s1952_s4 + $0x1c8] sm:$0xff] %v883_v49  ;;  %v856_v58 = vmax.f32 %v792_v50, 0.0  ;;  %v503_v60 = vadd.f32 %v1245_v54, %v1488_v42  ;;  %v631_v61 = vadd.f32 %v1277_v55, %v1488_v42  ;;  %v790_v62 = vadd.f32 %v1057_v35, %v492_v52 }
 0x120   :  { %v888_v59 = vmax.f32 %v824_v51, 0.0  ;;  %v822_v63 = vadd.f32 %v1121_v36, %v620_v53  ;;  %v494_v0 = vpop.f32.mrf.mxu0  ;;  %v622_v1 = vpop.f32.mrf.mxu1 }
 0x121   :  { %920 = vst [vmem:[%s1952_s4 + $0xf0] sm:$0xff] %v856_v58  ;;  %v793_v2 = vadd.f32 %v1062_v46, %v503_v60  ;;  %v825_v3 = vadd.f32 %v1126_v47, %v631_v61  ;;  %v495_v4 = vadd.f32 %v1488_v42, %v494_v0  ;;  %v623_v5 = vadd.f32 %v1488_v42, %v622_v1 }
 0x122   :  { %952 = vst [vmem:[%s1952_s4 + $0x1f0] sm:$0xff] %v888_v59  ;;  %v854_v6 = vmax.f32 %v790_v62, 0.0  ;;  %v886_v7 = vmax.f32 %v822_v63, 0.0 }
 0x123   :  { %v857_v8 = vmax.f32 %v793_v2, 0.0  ;;  %v889_v9 = vmax.f32 %v825_v3, 0.0  ;;  %v791_v10 = vadd.f32 %v1058_v56, %v495_v4  ;;  %v823_v11 = vadd.f32 %v1122_v57, %v623_v5 }
 0x124   :  { %918 = vst [vmem:[%s1952_s4 + $0xe0] sm:$0xff] %v854_v6  ;;  %950 = vst [vmem:[%s1952_s4 + $0x1e0] sm:$0xff] %v886_v7 }
 0x125   :  { %921 = vst [vmem:[%s1952_s4 + $0xf8] sm:$0xff] %v857_v8  ;;  %953 = vst [vmem:[%s1952_s4 + $0x1f8] sm:$0xff] %v889_v9  ;;  %v855_v42 = vmax.f32 %v791_v10, 0.0  ;;  %v887_v12 = vmax.f32 %v823_v11, 0.0 }
 0x127   :  { %919 = vst [vmem:[%s1952_s4 + $0xe8] sm:$0xff] %v855_v42  ;;  %951 = vst [vmem:[%s1952_s4 + $0x1e8] sm:$0xff] %v887_v12 }

</bundles_post_ra>
